<compile_context>
chip_gen: v5e
topology: v5e:2x2
jax: 0.10.0
libtpu: 0.0.40
codegen_flags: <defaults>
</compile_context>

<pallas_src>
import math
from functools import partial

import jax
import jax.numpy as jnp
from jax.experimental import pallas as pl
from jax.experimental.pallas import tpu as pltpu

MATMUL_DTYPE = jnp.bfloat16     # MXU operand dtype (accumulation stays f32)
LN_EPS = 1e-5
NEG_INF = -1e9


def _default_vmem_limit():
    """Per-generation scoped-VMEM budget (~80% of physical: ~102MiB v5e/v6e, ~51MiB v7x)."""
    try:
        cap = int(pltpu.get_tpu_info().vmem_capacity_bytes)
        if cap > 0:
            return max(16 * 1024 * 1024, int(cap * 0.8))
    except Exception:
        pass
    return 32 * 1024 * 1024


VMEM_LIMIT = _default_vmem_limit()


# ------------------------------ helpers (f32) ------------------------------

def _gelu_f32(x):
    # matches the PyTorch GELU class (tanh approximation), computed in f32
    return 0.5 * x * (1.0 + jnp.tanh(math.sqrt(2.0 / math.pi)
                                     * (x + 0.044715 * x ** 3)))


def _layer_norm_f32(y, gamma, beta):
    mu = jnp.mean(y, axis=-1, keepdims=True)
    var = jnp.mean((y - mu) ** 2, axis=-1, keepdims=True)
    return (y - mu) * jax.lax.rsqrt(var + LN_EPS) * gamma + beta


def _largest_divisor_tile(n, candidates):
    for c in candidates:
        if n % c == 0:
            return c
    return n


def _pick_row_tile(m):
    # Prefer large tiles (better roofline fraction) but keep >=2 grid steps so
    # both v7x TensorCores get work.
    for c in (512, 256, 128, 64, 32, 16, 8):
        if m % c == 0 and m // c >= 2:
            return c
    return _largest_divisor_tile(m, (512, 256, 128, 64, 32, 16, 8))


# ------------------------------ Pallas kernels ------------------------------

def qkv_proj_kernel(x_ref, w_ref, b_ref, o_ref):
    """Wide fused QKV projection for one row tile; 1/sqrt(d_k) folded into W_q."""
    x = x_ref[...].astype(MATMUL_DTYPE)                         # cast once per tile
    y = jnp.dot(x, w_ref[...], preferred_element_type=jnp.float32) + b_ref[...]
    o_ref[...] = y.astype(o_ref.dtype)                          # bf16 intermediate


def attention_kernel(q_ref, k_ref, v_ref, mask_ref, attn_ref, ctx_ref):
    """Scaled-dot-product attention for one (batch, head-group, query-tile)."""
    q = q_ref[0]                  # (hg, tq, d_k) bf16 (already scaled)
    k = k_ref[0]                  # (hg, L,  d_k) bf16
    v = v_ref[0]                  # (hg, L,  d_v) bf16
    m = mask_ref[0]               # (tq, L) int32, nonzero => masked

    # batched over the head-group dim -> one dot_general feeding the MXU
    s = jnp.einsum('hqd,hkd->hqk', q, k,
                   preferred_element_type=jnp.float32)           # (hg, tq, L) f32
    s = jnp.where((m != 0)[None, :, :], jnp.float32(NEG_INF), s)  # masked_fill
    s = s - jnp.max(s, axis=-1, keepdims=True)
    e = jnp.exp(s)
    a = e * pl.reciprocal(jnp.sum(e, axis=-1, keepdims=True), approx=False)

    attn_ref[0] = a                                              # (hg, tq, L) f32
    ctx_ref[0] = jnp.einsum('hqk,hkd->hqd', a.astype(MATMUL_DTYPE), v,
                            preferred_element_type=jnp.float32
                            ).astype(ctx_ref.dtype)              # bf16 context


def outproj_ffn_kernel(ctx_ref, x_ref, wo_ref, bo_ref, g1_ref, be1_ref,
                       w1_ref, b1_ref, w2_ref, b2_ref, g2_ref, be2_ref,
                       o_ref, y1_scr, y1b_scr):
    """Attention out-proj + residual + LN, fused with the FFN (d_ff tiled) + LN."""
    j = pl.program_id(1)

    @pl.when(j == 0)
    def _():
        ctx = ctx_ref[...]                                       # (tm, H*d_v) bf16
        x = x_ref[...]                                           # (tm, D) f32 residual
        attn_out = jnp.dot(ctx, wo_ref[...],
                           preferred_element_type=jnp.float32) + bo_ref[...]
        y1 = _layer_norm_f32(attn_out + x, g1_ref[...], be1_ref[...])
        y1_scr[...] = y1
        y1b_scr[...] = y1.astype(MATMUL_DTYPE)                   # cast hoisted once
        o_ref[...] = jnp.zeros_like(o_ref)                       # accumulator init

    # one d_ff chunk: linear -> GELU -> partial second linear, accumulate into o_ref
    h = jnp.dot(y1b_scr[...], w1_ref[...],
                preferred_element_type=jnp.float32) + b1_ref[...]
    h = _gelu_f32(h)
    o_ref[...] += jnp.dot(h.astype(MATMUL_DTYPE), w2_ref[...],
                          preferred_element_type=jnp.float32)

    @pl.when(j == pl.num_programs(1) - 1)
    def _():
        y2 = o_ref[...] + b2_ref[...] + y1_scr[...]              # bias + residual
        o_ref[...] = _layer_norm_f32(y2, g2_ref[...], be2_ref[...])


# --------------------------- kernel call wrappers ----------------------------

def mha_attention(pa, x, attn_mask, *, d_k, d_v, n_heads):
    """x: (B, L, D) f32; attn_mask: (B, L, L), nonzero => masked."""
    B, L, D = x.shape
    M = B * L
    hdk, hdv = n_heads * d_k, n_heads * d_v
    nqkv = 2 * hdk + hdv

    # ---- fused, wide QKV projection over row tiles ----
    tm = _pick_row_tile(M)
    qkv = pl.pallas_call(
        qkv_proj_kernel,
        out_shape=jax.ShapeDtypeStruct((M, nqkv), MATMUL_DTYPE),
        grid=(M // tm,),
        in_specs=[
            pl.BlockSpec((tm, D), lambda i: (i, 0)),             # x tile
            pl.BlockSpec((D, nqkv), lambda i: (0, 0)),           # wqkv (resident)
            pl.BlockSpec((1, nqkv), lambda i: (0, 0)),           # bqkv
        ],
        out_specs=pl.BlockSpec((tm, nqkv), lambda i: (i, 0)),
        compiler_params=pltpu.CompilerParams(
            dimension_semantics=("parallel",), vmem_limit_bytes=VMEM_LIMIT),
    )(x.reshape(M, D), pa["wqkv"], pa["bqkv"])

    # layout plumbing (linear-size XLA reshapes/transposes): (M, H*d) -> (B, H, L, d)
    q = qkv[:, :hdk].reshape(B, L, n_heads, d_k).transpose(0, 2, 1, 3)
    k = qkv[:, hdk:2 * hdk].reshape(B, L, n_heads, d_k).transpose(0, 2, 1, 3)
    v = qkv[:, 2 * hdk:].reshape(B, L, n_heads, d_v).transpose(0, 2, 1, 3)

    hg = next(g for g in (4, 2, 1) if n_heads % g == 0)          # head-group size
    tq = _largest_divisor_tile(L, (256, 128, 64, 32, 16, 8))     # query tile
    mask = attn_mask.astype(jnp.int32)                           # no f32 bias precompute

    attn, ctx = pl.pallas_call(
        attention_kernel,
        out_shape=(jax.ShapeDtypeStruct((B, n_heads, L, L), jnp.float32),
                   jax.ShapeDtypeStruct((B, n_heads, L, d_v), MATMUL_DTYPE)),
        grid=(B, n_heads // hg, L // tq),
        in_specs=[
            pl.BlockSpec((1, hg, tq, d_k), lambda b, g, qi: (b, g, qi, 0)),  # q tile
            pl.BlockSpec((1, hg, L, d_k), lambda b, g, qi: (b, g, 0, 0)),    # k (full keys)
            pl.BlockSpec((1, hg, L, d_v), lambda b, g, qi: (b, g, 0, 0)),    # v
            pl.BlockSpec((1, tq, L), lambda b, g, qi: (b, qi, 0)),           # mask tile
        ],
        out_specs=(pl.BlockSpec((1, hg, tq, L), lambda b, g, qi: (b, g, qi, 0)),
                   pl.BlockSpec((1, hg, tq, d_v), lambda b, g, qi: (b, g, qi, 0))),
        compiler_params=pltpu.CompilerParams(
            dimension_semantics=("parallel", "parallel", "parallel"),
            vmem_limit_bytes=VMEM_LIMIT),
    )(q, k, v, mask)

    # context back to the (M, H*d_v) layout PyTorch uses for the output projection
    ctx2 = ctx.transpose(0, 2, 1, 3).reshape(M, hdv)
    return ctx2, attn


def outproj_ffn(pa, pf, ctx2, x2):
    """ctx2: (M, H*d_v) bf16; x2: (M, D) f32 residual."""
    M, D = x2.shape
    hdv = ctx2.shape[1]
    d_ff = pf["w1"].shape[1]
    tm = _pick_row_tile(M)
    tf = _largest_divisor_tile(d_ff, (512, 256, 128, 64, 32, 16, 8))

    out = pl.pallas_call(
        outproj_ffn_kernel,
        out_shape=jax.ShapeDtypeStruct((M, D), jnp.float32),
        grid=(M // tm, d_ff // tf),
        in_specs=[
            pl.BlockSpec((tm, hdv), lambda i, j: (i, 0)),        # attention context
            pl.BlockSpec((tm, D), lambda i, j: (i, 0)),          # residual x
            pl.BlockSpec((hdv, D), lambda i, j: (0, 0)),         # wo (resident)
            pl.BlockSpec((1, D), lambda i, j: (0, 0)),           # bo
            pl.BlockSpec((1, D), lambda i, j: (0, 0)),           # ln1 gamma
            pl.BlockSpec((1, D), lambda i, j: (0, 0)),           # ln1 beta
            pl.BlockSpec((D, tf), lambda i, j: (0, j)),          # w1 chunk (streamed)
            pl.BlockSpec((1, tf), lambda i, j: (0, j)),          # b1 chunk
            pl.BlockSpec((tf, D), lambda i, j: (j, 0)),          # w2 chunk (streamed)
            pl.BlockSpec((1, D), lambda i, j: (0, 0)),           # b2
            pl.BlockSpec((1, D), lambda i, j: (0, 0)),           # ln2 gamma
            pl.BlockSpec((1, D), lambda i, j: (0, 0)),           # ln2 beta
        ],
        out_specs=pl.BlockSpec((tm, D), lambda i, j: (i, 0)),
        scratch_shapes=[pltpu.VMEM((tm, D), jnp.float32),        # y1 (post attn-LN)
                        pltpu.VMEM((tm, D), MATMUL_DTYPE)],      # y1 in bf16 (cast hoist)
        compiler_params=pltpu.CompilerParams(
            dimension_semantics=("parallel", "arbitrary"),
            vmem_limit_bytes=VMEM_LIMIT),
    )(ctx2, x2, pa["wo"], pa["bo"], pa["ln_g"], pa["ln_b"],
      pf["w1"], pf["b1"], pf["w2"], pf["b2"], pf["ln_g"], pf["ln_b"])
    return out


def encoder_layer(params, enc_inputs, enc_self_attn_mask, *, d_k, d_v, n_heads):
    B, L, D = enc_inputs.shape
    ctx2, attn = mha_attention(params["attn"], enc_inputs, enc_self_attn_mask,
                               d_k=d_k, d_v=d_v, n_heads=n_heads)
    out = outproj_ffn(params["attn"], params["ffn"], ctx2,
                      enc_inputs.reshape(B * L, D))
    return out.reshape(B, L, D), attn


# ------------------------- pure-JAX f32 reference ---------------------------

def _ln_ref(y, g, b):
    mu = jnp.mean(y, axis=-1, keepdims=True)
    var = jnp.mean((y - mu) ** 2, axis=-1, keepdims=True)
    return (y - mu) / jnp.sqrt(var + LN_EPS) * g + b


def encoder_layer_ref(pf, x, mask, *, d_k, d_v, n_heads):
    B, L, D = x.shape
    a = pf["attn"]
    q = (x @ a["wq"] + a["bq"]).reshape(B, L, n_heads, d_k).transpose(0, 2, 1, 3)
    k = (x @ a["wk"] + a["bk"]).reshape(B, L, n_heads, d_k).transpose(0, 2, 1, 3)
    v = (x @ a["wv"] + a["bv"]).reshape(B, L, n_heads, d_v).transpose(0, 2, 1, 3)
    scores = jnp.einsum("bhqd,bhkd->bhqk", q, k) / math.sqrt(d_k)
    scores = jnp.where(mask[:, None].astype(bool), NEG_INF, scores)
    attn = jax.nn.softmax(scores, axis=-1)
    ctx = jnp.einsum("bhqk,bhkd->bhqd", attn, v).transpose(0, 2, 1, 3).reshape(B, L, -1)
    out = _ln_ref(ctx @ a["wo"] + a["bo"] + x, a["ln_g"], a["ln_b"])
    f = pf["ffn"]
    h = _gelu_f32(out @ f["w1"] + f["b1"])
    out2 = _ln_ref(h @ f["w2"] + f["b2"] + out, f["ln_g"], f["ln_b"])
    return out2, attn


# ------------------------------- param init ---------------------------------

def _init_linear(key, din, dout):
    kw, kb = jax.random.split(key)
    bound = 1.0 / math.sqrt(din)
    w = jax.random.uniform(kw, (din, dout), jnp.float32, -bound, bound)
    b = jax.random.uniform(kb, (dout,), jnp.float32, -bound, bound)
    return w, b


def init_encoder_layer(key, d_model, d_ff, d_k, d_v, n_heads):
    ks = jax.random.split(key, 6)
    wq, bq = _init_linear(ks[0], d_model, d_k * n_heads)
    wk, bk = _init_linear(ks[1], d_model, d_k * n_heads)
    wv, bv = _init_linear(ks[2], d_model, d_v * n_heads)
    wo, bo = _init_linear(ks[3], n_heads * d_v, d_model)
    w1, b1 = _init_linear(ks[4], d_model, d_ff)
    w2, b2 = _init_linear(ks[5], d_ff, d_model)
    ones_d = jnp.ones((d_model,), jnp.float32)
    zeros_d = jnp.zeros((d_model,), jnp.float32)

    # f32 reference params (PyTorch-equivalent layout: y = x @ W + b)
    ref = dict(
        attn=dict(wq=wq, bq=bq, wk=wk, bk=bk, wv=wv, bv=bv, wo=wo, bo=bo,
                  ln_g=ones_d, ln_b=zeros_d),
        ffn=dict(w1=w1, b1=b1, w2=w2, b2=b2, ln_g=ones_d, ln_b=zeros_d),
    )

    # kernel params: QKV weights concatenated, 1/sqrt(d_k) folded into the Q
    # projection (weights AND bias), matmul weights pre-cast to bf16.
    scale = 1.0 / math.sqrt(d_k)
    dev = dict(
        attn=dict(
            wqkv=jnp.concatenate([wq * scale, wk, wv], axis=1).astype(MATMUL_DTYPE),
            bqkv=jnp.concatenate([bq * scale, bk, bv]).reshape(1, -1),
            wo=wo.astype(MATMUL_DTYPE), bo=bo.reshape(1, -1),
            ln_g=ones_d.reshape(1, -1), ln_b=zeros_d.reshape(1, -1)),
        ffn=dict(
            w1=w1.astype(MATMUL_DTYPE), b1=b1.reshape(1, -1),
            w2=w2.astype(MATMUL_DTYPE), b2=b2.reshape(1, -1),
            ln_g=ones_d.reshape(1, -1), ln_b=zeros_d.reshape(1, -1)),
    )
    return dev, ref


# ----------------------------------- main ------------------------------------

if __name__ == "__main__":
    B, L = 2, 8
    d_model, d_ff, d_k, d_v, n_heads = 32, 64, 16, 16, 4

    key = jax.random.PRNGKey(0)
    kp, kx = jax.random.split(key)
    params, params_ref = init_encoder_layer(kp, d_model, d_ff, d_k, d_v, n_heads)

    enc_inputs = jax.random.normal(kx, (B, L, d_model), jnp.float32)
    # pad-style self-attention mask: batch 0 has its last 2 key positions masked
    key_is_pad = jnp.zeros((B, L), jnp.int32).at[0, -2:].set(1)
    enc_self_attn_mask = jnp.broadcast_to(key_is_pad[:, None, :], (B, L, L)).astype(jnp.int32)

    fwd = jax.jit(partial(encoder_layer, d_k=d_k, d_v=d_v, n_heads=n_heads))
    out, attn = fwd(params, enc_inputs, enc_self_attn_mask)
    jax.block_until_ready((out, attn))

    # shape / sanity checks
    assert out.shape == (B, L, d_model)
    assert attn.shape == (B, n_heads, L, L)
    assert bool(jnp.all(jnp.isfinite(out)))
    assert bool(jnp.all(jnp.isfinite(attn)))
    row_sums = jnp.sum(attn, axis=-1)
    assert bool(jnp.all(jnp.abs(row_sums - 1.0) < 1e-3))   # exact normalization now
    # masked key columns get ~zero attention
    assert bool(jnp.all(attn[0, :, :, -2:] < 1e-6))

    # numerical check vs pure-JAX f32 reference (loose: bf16 matmul operands)
    out_ref, attn_ref = encoder_layer_ref(params_ref, enc_inputs, enc_self_attn_mask,
                                          d_k=d_k, d_v=d_v, n_heads=n_heads)
    assert float(jnp.max(jnp.abs(out - out_ref))) < 0.2
    assert float(jnp.max(jnp.abs(attn - attn_ref))) < 0.05

    print("KERNEL_OK")
</pallas_src>

<mosaic_0001>
module attributes {stable_mosaic.version = 11 : i64} {
  func.func @qkv_proj_kernel(%arg0: i32, %arg1: memref<8x32xf32, #tpu.memory_space<vmem>>, %arg2: memref<32x192xbf16, #tpu.memory_space<vmem>>, %arg3: memref<1x192xf32, #tpu.memory_space<vmem>>, %arg4: memref<8x192xbf16, #tpu.memory_space<vmem>>) attributes {dimension_semantics = [#tpu.dimension_semantics<parallel>], iteration_bounds = array<i64: 2>, scalar_prefetch = 0 : i64, scratch_operands = 0 : i64, tpu.core_type = #tpu.core_type<tc>, window_params = [{transform_indices = @transform_0, window_bounds = array<i64: 8, 32>}, {pipeline_mode = #tpu.pipeline_mode<synchronous>, transform_indices = @transform_1, window_bounds = array<i64: 32, 192>}, {pipeline_mode = #tpu.pipeline_mode<synchronous>, transform_indices = @transform_2, window_bounds = array<i64: 1, 192>}, {transform_indices = @transform_3, window_bounds = array<i64: 8, 192>}]} {
    %c0 = arith.constant 0 : index
    %c0_0 = arith.constant 0 : index
    %0 = vector.load %arg1[%c0, %c0_0] : memref<8x32xf32, #tpu.memory_space<vmem>>, vector<8x32xf32>
    %1 = arith.truncf %0 : vector<8x32xf32> to vector<8x32xbf16>
    %c0_1 = arith.constant 0 : index
    %c0_2 = arith.constant 0 : index
    %2 = vector.load %arg2[%c0_1, %c0_2] : memref<32x192xbf16, #tpu.memory_space<vmem>>, vector<32x192xbf16>
    %cst = arith.constant dense<0.000000e+00> : vector<8x192xf32>
    %3 = tpu.matmul %1, %2, %cst {dimension_numbers = #tpu.dot_dimension_numbers<[1], [0], [0], [1], [0, 0, 1, 1], [], []>} : vector<8x32xbf16>, vector<32x192xbf16>, vector<8x192xf32> -> vector<8x192xf32>
    %c0_3 = arith.constant 0 : index
    %c0_4 = arith.constant 0 : index
    %4 = vector.load %arg3[%c0_3, %c0_4] : memref<1x192xf32, #tpu.memory_space<vmem>>, vector<1x192xf32>
    %5 = vector.broadcast %4 : vector<1x192xf32> to vector<8x192xf32>
    %6 = arith.addf %3, %5 : vector<8x192xf32>
    %7 = arith.truncf %6 : vector<8x192xf32> to vector<8x192xbf16>
    %c0_5 = arith.constant 0 : index
    %c0_6 = arith.constant 0 : index
    %8 = vector.load %arg4[%c0_5, %c0_6] : memref<8x192xbf16, #tpu.memory_space<vmem>>, vector<8x192xbf16>
    tpu.vector_store %arg4[%c0_5, %c0_6], %7 {strides = array<i32>} : memref<8x192xbf16, #tpu.memory_space<vmem>>, vector<8x192xbf16>,
    return
  }
  func.func @transform_0(%arg0: i32) -> (i32, i32) {
    %c0_i32 = arith.constant 0 : i32
    %c0_i32_0 = arith.constant 0 : i32
    return %arg0, %c0_i32 : i32, i32
  }
  func.func @transform_1(%arg0: i32) -> (i32, i32) {
    %c0_i32 = arith.constant 0 : i32
    %c0_i32_0 = arith.constant 0 : i32
    %c0_i32_1 = arith.constant 0 : i32
    return %c0_i32, %c0_i32_0 : i32, i32
  }
  func.func @transform_2(%arg0: i32) -> (i32, i32) {
    %c0_i32 = arith.constant 0 : i32
    %c0_i32_0 = arith.constant 0 : i32
    %c0_i32_1 = arith.constant 0 : i32
    return %c0_i32, %c0_i32_0 : i32, i32
  }
  func.func @transform_3(%arg0: i32) -> (i32, i32) {
    %c0_i32 = arith.constant 0 : i32
    %c0_i32_0 = arith.constant 0 : i32
    return %arg0, %c0_i32 : i32, i32
  }
}

module attributes {stable_mosaic.version = 11 : i64} {
  func.func @attention_kernel(%arg0: i32, %arg1: i32, %arg2: i32, %arg3: memref<1x4x8x16xbf16, #tpu.memory_space<vmem>>, %arg4: memref<1x4x8x16xbf16, #tpu.memory_space<vmem>>, %arg5: memref<1x4x8x16xbf16, #tpu.memory_space<vmem>>, %arg6: memref<1x8x8xi32, #tpu.memory_space<vmem>>, %arg7: memref<1x4x8x8xf32, #tpu.memory_space<vmem>>, %arg8: memref<1x4x8x16xbf16, #tpu.memory_space<vmem>>) attributes {dimension_semantics = [#tpu.dimension_semantics<parallel>, #tpu.dimension_semantics<parallel>, #tpu.dimension_semantics<parallel>], iteration_bounds = array<i64: 2, 1, 1>, scalar_prefetch = 0 : i64, scratch_operands = 0 : i64, tpu.core_type = #tpu.core_type<tc>, window_params = [{transform_indices = @transform_0, window_bounds = array<i64: 1, 4, 8, 16>}, {transform_indices = @transform_1, window_bounds = array<i64: 1, 4, 8, 16>}, {transform_indices = @transform_2, window_bounds = array<i64: 1, 4, 8, 16>}, {transform_indices = @transform_3, window_bounds = array<i64: 1, 8, 8>}, {transform_indices = @transform_4, window_bounds = array<i64: 1, 4, 8, 8>}, {transform_indices = @transform_5, window_bounds = array<i64: 1, 4, 8, 16>}]} {
    %c0 = arith.constant 0 : index
    %c0_0 = arith.constant 0 : index
    %c0_1 = arith.constant 0 : index
    %c0_2 = arith.constant 0 : index
    %0 = vector.load %arg3[%c0, %c0_0, %c0_1, %c0_2] : memref<1x4x8x16xbf16, #tpu.memory_space<vmem>>, vector<1x4x8x16xbf16>
    %1 = vector.shape_cast %0 : vector<1x4x8x16xbf16> to vector<4x8x16xbf16>
    %c0_3 = arith.constant 0 : index
    %c0_4 = arith.constant 0 : index
    %c0_5 = arith.constant 0 : index
    %c0_6 = arith.constant 0 : index
    %2 = vector.load %arg4[%c0_3, %c0_4, %c0_5, %c0_6] : memref<1x4x8x16xbf16, #tpu.memory_space<vmem>>, vector<1x4x8x16xbf16>
    %3 = vector.shape_cast %2 : vector<1x4x8x16xbf16> to vector<4x8x16xbf16>
    %c0_7 = arith.constant 0 : index
    %c0_8 = arith.constant 0 : index
    %c0_9 = arith.constant 0 : index
    %c0_10 = arith.constant 0 : index
    %4 = vector.load %arg5[%c0_7, %c0_8, %c0_9, %c0_10] : memref<1x4x8x16xbf16, #tpu.memory_space<vmem>>, vector<1x4x8x16xbf16>
    %5 = vector.shape_cast %4 : vector<1x4x8x16xbf16> to vector<4x8x16xbf16>
    %c0_11 = arith.constant 0 : index
    %c0_12 = arith.constant 0 : index
    %c0_13 = arith.constant 0 : index
    %6 = vector.load %arg6[%c0_11, %c0_12, %c0_13] : memref<1x8x8xi32, #tpu.memory_space<vmem>>, vector<1x8x8xi32>
    %7 = vector.shape_cast %6 : vector<1x8x8xi32> to vector<8x8xi32>
    "tpu.trace_start"() <{level = 10 : i32, message = "hqd,hkd->hqk"}> : () -> ()
    %cst = arith.constant dense<0.000000e+00> : vector<4x8x8xf32>
    %8 = tpu.matmul %1, %3, %cst {dimension_numbers = #tpu.dot_dimension_numbers<[2], [2], [1], [1], [0, 0, 0, 1, 1, 1], [0], [0]>} : vector<4x8x16xbf16>, vector<4x8x16xbf16>, vector<4x8x8xf32> -> vector<4x8x8xf32>
    %c0_i32 = arith.constant 0 : i32
    "tpu.trace_stop"() : () -> ()
    %9 = vector.broadcast %c0_i32 : i32 to vector<8x8xi32>
    %10 = arith.cmpi ne, %7, %9 : vector<8x8xi32>
    %11 = vector.shape_cast %10 : vector<8x8xi1> to vector<1x8x8xi1>
    %cst_14 = arith.constant -1.000000e+09 : f32
    %12 = vector.shape_cast %11 : vector<1x8x8xi1> to vector<1x8x8xi1>
    %13 = vector.broadcast %12 : vector<1x8x8xi1> to vector<4x8x8xi1>
    %14 = vector.broadcast %cst_14 : f32 to vector<4x8x8xf32>
    %15 = arith.select %13, %14, %8 : vector<4x8x8xi1>, vector<4x8x8xf32>
    %cst_15 = arith.constant dense<0xFF800000> : vector<4x8xf32>
    %16 = vector.multi_reduction <maximumf>, %15, %cst_15 [2] : vector<4x8x8xf32> to vector<4x8xf32>
    %17 = vector.shape_cast %16 : vector<4x8xf32> to vector<4x8x1xf32>
    %18 = vector.broadcast %17 : vector<4x8x1xf32> to vector<4x8x8xf32>
    %19 = arith.subf %15, %18 : vector<4x8x8xf32>
    %20 = math.exp %19 : vector<4x8x8xf32>
    %cst_16 = arith.constant dense<0.000000e+00> : vector<4x8xf32>
    %21 = vector.multi_reduction <add>, %20, %cst_16 [2] : vector<4x8x8xf32> to vector<4x8xf32>
    %22 = vector.shape_cast %21 : vector<4x8xf32> to vector<4x8x1xf32>
    %23 = tpu.reciprocal %22 : vector<4x8x1xf32> -> vector<4x8x1xf32>
    %24 = vector.broadcast %23 : vector<4x8x1xf32> to vector<4x8x8xf32>
    %25 = arith.mulf %20, %24 : vector<4x8x8xf32>
    %c0_17 = arith.constant 0 : index
    %c0_18 = arith.constant 0 : index
    %c0_19 = arith.constant 0 : index
    %c0_20 = arith.constant 0 : index
    %26 = vector.load %arg7[%c0_17, %c0_18, %c0_19, %c0_20] : memref<1x4x8x8xf32, #tpu.memory_space<vmem>>, vector<1x4x8x8xf32>
    %27 = vector.shape_cast %26 : vector<1x4x8x8xf32> to vector<4x8x8xf32>
    %28 = vector.shape_cast %25 : vector<4x8x8xf32> to vector<1x4x8x8xf32>
    tpu.vector_store %arg7[%c0_17, %c0_18, %c0_19, %c0_20], %28 {strides = array<i32>} : memref<1x4x8x8xf32, #tpu.memory_space<vmem>>, vector<1x4x8x8xf32>,
    %29 = arith.truncf %25 : vector<4x8x8xf32> to vector<4x8x8xbf16>
    "tpu.trace_start"() <{level = 10 : i32, message = "hqk,hkd->hqd"}> : () -> ()
    %cst_21 = arith.constant dense<0.000000e+00> : vector<4x8x16xf32>
    %30 = tpu.matmul %29, %5, %cst_21 {dimension_numbers = #tpu.dot_dimension_numbers<[2], [1], [1], [2], [0, 0, 0, 1, 1, 2], [0], [0]>} : vector<4x8x8xbf16>, vector<4x8x16xbf16>, vector<4x8x16xf32> -> vector<4x8x16xf32>
    "tpu.trace_stop"() : () -> ()
    %31 = arith.truncf %30 : vector<4x8x16xf32> to vector<4x8x16xbf16>
    %c0_22 = arith.constant 0 : index
    %c0_23 = arith.constant 0 : index
    %c0_24 = arith.constant 0 : index
    %c0_25 = arith.constant 0 : index
    %32 = vector.load %arg8[%c0_22, %c0_23, %c0_24, %c0_25] : memref<1x4x8x16xbf16, #tpu.memory_space<vmem>>, vector<1x4x8x16xbf16>
    %33 = vector.shape_cast %32 : vector<1x4x8x16xbf16> to vector<4x8x16xbf16>
    %34 = vector.shape_cast %31 : vector<4x8x16xbf16> to vector<1x4x8x16xbf16>
    tpu.vector_store %arg8[%c0_22, %c0_23, %c0_24, %c0_25], %34 {strides = array<i32>} : memref<1x4x8x16xbf16, #tpu.memory_space<vmem>>, vector<1x4x8x16xbf16>,
    return
  }
  func.func @transform_0(%arg0: i32, %arg1: i32, %arg2: i32) -> (i32, i32, i32, i32) {
    %c0_i32 = arith.constant 0 : i32
    %c0_i32_0 = arith.constant 0 : i32
    return %arg0, %arg1, %arg2, %c0_i32 : i32, i32, i32, i32
  }
  func.func @transform_1(%arg0: i32, %arg1: i32, %arg2: i32) -> (i32, i32, i32, i32) {
    %c0_i32 = arith.constant 0 : i32
    %c0_i32_0 = arith.constant 0 : i32
    %c0_i32_1 = arith.constant 0 : i32
    return %arg0, %arg1, %c0_i32, %c0_i32_0 : i32, i32, i32, i32
  }
  func.func @transform_2(%arg0: i32, %arg1: i32, %arg2: i32) -> (i32, i32, i32, i32) {
    %c0_i32 = arith.constant 0 : i32
    %c0_i32_0 = arith.constant 0 : i32
    %c0_i32_1 = arith.constant 0 : i32
    return %arg0, %arg1, %c0_i32, %c0_i32_0 : i32, i32, i32, i32
  }
  func.func @transform_3(%arg0: i32, %arg1: i32, %arg2: i32) -> (i32, i32, i32) {
    %c0_i32 = arith.constant 0 : i32
    %c0_i32_0 = arith.constant 0 : i32
    return %arg0, %arg2, %c0_i32 : i32, i32, i32
  }
  func.func @transform_4(%arg0: i32, %arg1: i32, %arg2: i32) -> (i32, i32, i32, i32) {
    %c0_i32 = arith.constant 0 : i32
    %c0_i32_0 = arith.constant 0 : i32
    return %arg0, %arg1, %arg2, %c0_i32 : i32, i32, i32, i32
  }
  func.func @transform_5(%arg0: i32, %arg1: i32, %arg2: i32) -> (i32, i32, i32, i32) {
    %c0_i32 = arith.constant 0 : i32
    %c0_i32_0 = arith.constant 0 : i32
    return %arg0, %arg1, %arg2, %c0_i32 : i32, i32, i32, i32
  }
}

module attributes {stable_mosaic.version = 11 : i64} {
  func.func @outproj_ffn_kernel(%arg0: i32, %arg1: i32, %arg2: memref<8x64xbf16, #tpu.memory_space<vmem>>, %arg3: memref<8x32xf32, #tpu.memory_space<vmem>>, %arg4: memref<64x32xbf16, #tpu.memory_space<vmem>>, %arg5: memref<1x32xf32, #tpu.memory_space<vmem>>, %arg6: memref<1x32xf32, #tpu.memory_space<vmem>>, %arg7: memref<1x32xf32, #tpu.memory_space<vmem>>, %arg8: memref<32x64xbf16, #tpu.memory_space<vmem>>, %arg9: memref<1x64xf32, #tpu.memory_space<vmem>>, %arg10: memref<64x32xbf16, #tpu.memory_space<vmem>>, %arg11: memref<1x32xf32, #tpu.memory_space<vmem>>, %arg12: memref<1x32xf32, #tpu.memory_space<vmem>>, %arg13: memref<1x32xf32, #tpu.memory_space<vmem>>, %arg14: memref<8x32xf32, #tpu.memory_space<vmem>>, %arg15: memref<8x32xf32, #tpu.memory_space<vmem>>, %arg16: memref<8x32xbf16, #tpu.memory_space<vmem>>) attributes {dimension_semantics = [#tpu.dimension_semantics<parallel>, #tpu.dimension_semantics<arbitrary>], iteration_bounds = array<i64: 2, 1>, scalar_prefetch = 0 : i64, scratch_operands = 2 : i64, tpu.core_type = #tpu.core_type<tc>, window_params = [{transform_indices = @transform_0, window_bounds = array<i64: 8, 64>}, {transform_indices = @transform_1, window_bounds = array<i64: 8, 32>}, {pipeline_mode = #tpu.pipeline_mode<synchronous>, transform_indices = @transform_2, window_bounds = array<i64: 64, 32>}, {pipeline_mode = #tpu.pipeline_mode<synchronous>, transform_indices = @transform_3, window_bounds = array<i64: 1, 32>}, {pipeline_mode = #tpu.pipeline_mode<synchronous>, transform_indices = @transform_4, window_bounds = array<i64: 1, 32>}, {pipeline_mode = #tpu.pipeline_mode<synchronous>, transform_indices = @transform_5, window_bounds = array<i64: 1, 32>}, {transform_indices = @transform_6, window_bounds = array<i64: 32, 64>}, {transform_indices = @transform_7, window_bounds = array<i64: 1, 64>}, {transform_indices = @transform_8, window_bounds = array<i64: 64, 32>}, {pipeline_mode = #tpu.pipeline_mode<synchronous>, transform_indices = @transform_9, window_bounds = array<i64: 1, 32>}, {pipeline_mode = #tpu.pipeline_mode<synchronous>, transform_indices = @transform_10, window_bounds = array<i64: 1, 32>}, {pipeline_mode = #tpu.pipeline_mode<synchronous>, transform_indices = @transform_11, window_bounds = array<i64: 1, 32>}, {transform_indices = @transform_12, window_bounds = array<i64: 8, 32>}]} {
    %c0_i32 = arith.constant 0 : i32
    %0 = arith.cmpi eq, %arg1, %c0_i32 : i32
    %1 = arith.extui %0 : i1 to i32
    %c0_i32_0 = arith.constant 0 : i32
    %2 = arith.cmpi ne, %1, %c0_i32_0 : i32
    scf.if %2 {
      %c0_19 = arith.constant 0 : index
      %c0_20 = arith.constant 0 : index
      %31 = vector.load %arg2[%c0_19, %c0_20] : memref<8x64xbf16, #tpu.memory_space<vmem>>, vector<8x64xbf16>
      %c0_21 = arith.constant 0 : index
      %c0_22 = arith.constant 0 : index
      %32 = vector.load %arg3[%c0_21, %c0_22] : memref<8x32xf32, #tpu.memory_space<vmem>>, vector<8x32xf32>
      %c0_23 = arith.constant 0 : index
      %c0_24 = arith.constant 0 : index
      %33 = vector.load %arg4[%c0_23, %c0_24] : memref<64x32xbf16, #tpu.memory_space<vmem>>, vector<64x32xbf16>
      %cst_25 = arith.constant dense<0.000000e+00> : vector<8x32xf32>
      %34 = tpu.matmul %31, %33, %cst_25 {dimension_numbers = #tpu.dot_dimension_numbers<[1], [0], [0], [1], [0, 0, 1, 1], [], []>} : vector<8x64xbf16>, vector<64x32xbf16>, vector<8x32xf32> -> vector<8x32xf32>
      %c0_26 = arith.constant 0 : index
      %c0_27 = arith.constant 0 : index
      %35 = vector.load %arg5[%c0_26, %c0_27] : memref<1x32xf32, #tpu.memory_space<vmem>>, vector<1x32xf32>
      %36 = vector.broadcast %35 : vector<1x32xf32> to vector<8x32xf32>
      %37 = arith.addf %34, %36 : vector<8x32xf32>
      %38 = arith.addf %37, %32 : vector<8x32xf32>
      %c0_28 = arith.constant 0 : index
      %c0_29 = arith.constant 0 : index
      %39 = vector.load %arg6[%c0_28, %c0_29] : memref<1x32xf32, #tpu.memory_space<vmem>>, vector<1x32xf32>
      %c0_30 = arith.constant 0 : index
      %c0_31 = arith.constant 0 : index
      %40 = vector.load %arg7[%c0_30, %c0_31] : memref<1x32xf32, #tpu.memory_space<vmem>>, vector<1x32xf32>
      %cst_32 = arith.constant dense<0.000000e+00> : vector<8xf32>
      %41 = vector.multi_reduction <add>, %38, %cst_32 [1] : vector<8x32xf32> to vector<8xf32>
      %42 = vector.shape_cast %41 : vector<8xf32> to vector<8x1xf32>
      %cst_33 = arith.constant 3.200000e+01 : f32
      %43 = vector.broadcast %cst_33 : f32 to vector<8x1xf32>
      %44 = arith.divf %42, %43 : vector<8x1xf32>
      %45 = vector.broadcast %44 : vector<8x1xf32> to vector<8x32xf32>
      %46 = arith.subf %38, %45 : vector<8x32xf32>
      %47 = arith.mulf %46, %46 : vector<8x32xf32>
      %cst_34 = arith.constant dense<0.000000e+00> : vector<8xf32>
      %48 = vector.multi_reduction <add>, %47, %cst_34 [1] : vector<8x32xf32> to vector<8xf32>
      %49 = vector.shape_cast %48 : vector<8xf32> to vector<8x1xf32>
      %cst_35 = arith.constant 3.200000e+01 : f32
      %50 = vector.broadcast %cst_35 : f32 to vector<8x1xf32>
      %51 = arith.divf %49, %50 : vector<8x1xf32>
      %52 = vector.broadcast %44 : vector<8x1xf32> to vector<8x32xf32>
      %53 = arith.subf %38, %52 : vector<8x32xf32>
      %cst_36 = arith.constant 9.99999974E-6 : f32
      %54 = vector.broadcast %cst_36 : f32 to vector<8x1xf32>
      %55 = arith.addf %51, %54 : vector<8x1xf32>
      %56 = math.rsqrt %55 : vector<8x1xf32>
      %57 = vector.broadcast %56 : vector<8x1xf32> to vector<8x32xf32>
      %58 = arith.mulf %53, %57 : vector<8x32xf32>
      %59 = vector.broadcast %39 : vector<1x32xf32> to vector<8x32xf32>
      %60 = arith.mulf %58, %59 : vector<8x32xf32>
      %61 = vector.broadcast %40 : vector<1x32xf32> to vector<8x32xf32>
      %62 = arith.addf %60, %61 : vector<8x32xf32>
      %c0_37 = arith.constant 0 : index
      %c0_38 = arith.constant 0 : index
      %63 = vector.load %arg15[%c0_37, %c0_38] : memref<8x32xf32, #tpu.memory_space<vmem>>, vector<8x32xf32>
      tpu.vector_store %arg15[%c0_37, %c0_38], %62 {strides = array<i32>} : memref<8x32xf32, #tpu.memory_space<vmem>>, vector<8x32xf32>,
      %64 = arith.truncf %62 : vector<8x32xf32> to vector<8x32xbf16>
      %c0_39 = arith.constant 0 : index
      %c0_40 = arith.constant 0 : index
      %65 = vector.load %arg16[%c0_39, %c0_40] : memref<8x32xbf16, #tpu.memory_space<vmem>>, vector<8x32xbf16>
      tpu.vector_store %arg16[%c0_39, %c0_40], %64 {strides = array<i32>} : memref<8x32xbf16, #tpu.memory_space<vmem>>, vector<8x32xbf16>,
      %cst_41 = arith.constant 0.000000e+00 : f32
      %66 = vector.broadcast %cst_41 : f32 to vector<8x32xf32>
      %c0_42 = arith.constant 0 : index
      %c0_43 = arith.constant 0 : index
      %67 = vector.load %arg14[%c0_42, %c0_43] : memref<8x32xf32, #tpu.memory_space<vmem>>, vector<8x32xf32>
      tpu.vector_store %arg14[%c0_42, %c0_43], %66 {strides = array<i32>} : memref<8x32xf32, #tpu.memory_space<vmem>>, vector<8x32xf32>,
    } else {
    }
    %c0 = arith.constant 0 : index
    %c0_1 = arith.constant 0 : index
    %3 = vector.load %arg16[%c0, %c0_1] : memref<8x32xbf16, #tpu.memory_space<vmem>>, vector<8x32xbf16>
    %c0_2 = arith.constant 0 : index
    %c0_3 = arith.constant 0 : index
    %4 = vector.load %arg8[%c0_2, %c0_3] : memref<32x64xbf16, #tpu.memory_space<vmem>>, vector<32x64xbf16>
    %cst = arith.constant dense<0.000000e+00> : vector<8x64xf32>
    %5 = tpu.matmul %3, %4, %cst {dimension_numbers = #tpu.dot_dimension_numbers<[1], [0], [0], [1], [0, 0, 1, 1], [], []>} : vector<8x32xbf16>, vector<32x64xbf16>, vector<8x64xf32> -> vector<8x64xf32>
    %c0_4 = arith.constant 0 : index
    %c0_5 = arith.constant 0 : index
    %6 = vector.load %arg9[%c0_4, %c0_5] : memref<1x64xf32, #tpu.memory_space<vmem>>, vector<1x64xf32>
    %7 = vector.broadcast %6 : vector<1x64xf32> to vector<8x64xf32>
    %8 = arith.addf %5, %7 : vector<8x64xf32>
    %cst_6 = arith.constant 5.000000e-01 : f32
    %9 = vector.broadcast %cst_6 : f32 to vector<8x64xf32>
    %10 = arith.mulf %9, %8 : vector<8x64xf32>
    %11 = arith.mulf %8, %8 : vector<8x64xf32>
    %12 = arith.mulf %8, %11 : vector<8x64xf32>
    %cst_7 = arith.constant 4.471500e-02 : f32
    %13 = vector.broadcast %cst_7 : f32 to vector<8x64xf32>
    %14 = arith.mulf %13, %12 : vector<8x64xf32>
    %15 = arith.addf %8, %14 : vector<8x64xf32>
    %cst_8 = arith.constant 0.797884583 : f32
    %16 = vector.broadcast %cst_8 : f32 to vector<8x64xf32>
    %17 = arith.mulf %16, %15 : vector<8x64xf32>
    %18 = math.tanh %17 : vector<8x64xf32>
    %cst_9 = arith.constant 1.000000e+00 : f32
    %19 = vector.broadcast %cst_9 : f32 to vector<8x64xf32>
    %20 = arith.addf %19, %18 : vector<8x64xf32>
    %21 = arith.mulf %10, %20 : vector<8x64xf32>
    %c0_10 = arith.constant 0 : index
    %c0_11 = arith.constant 0 : index
    %22 = vector.load %arg14[%c0_10, %c0_11] : memref<8x32xf32, #tpu.memory_space<vmem>>, vector<8x32xf32>
    %23 = arith.truncf %21 : vector<8x64xf32> to vector<8x64xbf16>
    %c0_12 = arith.constant 0 : index
    %c0_13 = arith.constant 0 : index
    %24 = vector.load %arg10[%c0_12, %c0_13] : memref<64x32xbf16, #tpu.memory_space<vmem>>, vector<64x32xbf16>
    %cst_14 = arith.constant dense<0.000000e+00> : vector<8x32xf32>
    %25 = tpu.matmul %23, %24, %cst_14 {dimension_numbers = #tpu.dot_dimension_numbers<[1], [0], [0], [1], [0, 0, 1, 1], [], []>} : vector<8x64xbf16>, vector<64x32xbf16>, vector<8x32xf32> -> vector<8x32xf32>
    %26 = arith.addf %22, %25 : vector<8x32xf32>
    %c0_15 = arith.constant 0 : index
    %c0_16 = arith.constant 0 : index
    %27 = vector.load %arg14[%c0_15, %c0_16] : memref<8x32xf32, #tpu.memory_space<vmem>>, vector<8x32xf32>
    tpu.vector_store %arg14[%c0_15, %c0_16], %26 {strides = array<i32>} : memref<8x32xf32, #tpu.memory_space<vmem>>, vector<8x32xf32>,
    %c0_i32_17 = arith.constant 0 : i32
    %28 = arith.cmpi eq, %arg1, %c0_i32_17 : i32
    %29 = arith.extui %28 : i1 to i32
    %c0_i32_18 = arith.constant 0 : i32
    %30 = arith.cmpi ne, %29, %c0_i32_18 : i32
    scf.if %30 {
      %c0_19 = arith.constant 0 : index
      %c0_20 = arith.constant 0 : index
      %31 = vector.load %arg14[%c0_19, %c0_20] : memref<8x32xf32, #tpu.memory_space<vmem>>, vector<8x32xf32>
      %c0_21 = arith.constant 0 : index
      %c0_22 = arith.constant 0 : index
      %32 = vector.load %arg11[%c0_21, %c0_22] : memref<1x32xf32, #tpu.memory_space<vmem>>, vector<1x32xf32>
      %33 = vector.broadcast %32 : vector<1x32xf32> to vector<8x32xf32>
      %34 = arith.addf %31, %33 : vector<8x32xf32>
      %c0_23 = arith.constant 0 : index
      %c0_24 = arith.constant 0 : index
      %35 = vector.load %arg15[%c0_23, %c0_24] : memref<8x32xf32, #tpu.memory_space<vmem>>, vector<8x32xf32>
      %36 = arith.addf %34, %35 : vector<8x32xf32>
      %c0_25 = arith.constant 0 : index
      %c0_26 = arith.constant 0 : index
      %37 = vector.load %arg12[%c0_25, %c0_26] : memref<1x32xf32, #tpu.memory_space<vmem>>, vector<1x32xf32>
      %c0_27 = arith.constant 0 : index
      %c0_28 = arith.constant 0 : index
      %38 = vector.load %arg13[%c0_27, %c0_28] : memref<1x32xf32, #tpu.memory_space<vmem>>, vector<1x32xf32>
      %cst_29 = arith.constant dense<0.000000e+00> : vector<8xf32>
      %39 = vector.multi_reduction <add>, %36, %cst_29 [1] : vector<8x32xf32> to vector<8xf32>
      %40 = vector.shape_cast %39 : vector<8xf32> to vector<8x1xf32>
      %cst_30 = arith.constant 3.200000e+01 : f32
      %41 = vector.broadcast %cst_30 : f32 to vector<8x1xf32>
      %42 = arith.divf %40, %41 : vector<8x1xf32>
      %43 = vector.broadcast %42 : vector<8x1xf32> to vector<8x32xf32>
      %44 = arith.subf %36, %43 : vector<8x32xf32>
      %45 = arith.mulf %44, %44 : vector<8x32xf32>
      %cst_31 = arith.constant dense<0.000000e+00> : vector<8xf32>
      %46 = vector.multi_reduction <add>, %45, %cst_31 [1] : vector<8x32xf32> to vector<8xf32>
      %47 = vector.shape_cast %46 : vector<8xf32> to vector<8x1xf32>
      %cst_32 = arith.constant 3.200000e+01 : f32
      %48 = vector.broadcast %cst_32 : f32 to vector<8x1xf32>
      %49 = arith.divf %47, %48 : vector<8x1xf32>
      %50 = vector.broadcast %42 : vector<8x1xf32> to vector<8x32xf32>
      %51 = arith.subf %36, %50 : vector<8x32xf32>
      %cst_33 = arith.constant 9.99999974E-6 : f32
      %52 = vector.broadcast %cst_33 : f32 to vector<8x1xf32>
      %53 = arith.addf %49, %52 : vector<8x1xf32>
      %54 = math.rsqrt %53 : vector<8x1xf32>
      %55 = vector.broadcast %54 : vector<8x1xf32> to vector<8x32xf32>
      %56 = arith.mulf %51, %55 : vector<8x32xf32>
      %57 = vector.broadcast %37 : vector<1x32xf32> to vector<8x32xf32>
      %58 = arith.mulf %56, %57 : vector<8x32xf32>
      %59 = vector.broadcast %38 : vector<1x32xf32> to vector<8x32xf32>
      %60 = arith.addf %58, %59 : vector<8x32xf32>
      %c0_34 = arith.constant 0 : index
      %c0_35 = arith.constant 0 : index
      %61 = vector.load %arg14[%c0_34, %c0_35] : memref<8x32xf32, #tpu.memory_space<vmem>>, vector<8x32xf32>
      tpu.vector_store %arg14[%c0_34, %c0_35], %60 {strides = array<i32>} : memref<8x32xf32, #tpu.memory_space<vmem>>, vector<8x32xf32>,
    } else {
    }
    return
  }
  func.func @transform_0(%arg0: i32, %arg1: i32) -> (i32, i32) {
    %c0_i32 = arith.constant 0 : i32
    %c0_i32_0 = arith.constant 0 : i32
    return %arg0, %c0_i32 : i32, i32
  }
  func.func @transform_1(%arg0: i32, %arg1: i32) -> (i32, i32) {
    %c0_i32 = arith.constant 0 : i32
    %c0_i32_0 = arith.constant 0 : i32
    return %arg0, %c0_i32 : i32, i32
  }
  func.func @transform_2(%arg0: i32, %arg1: i32) -> (i32, i32) {
    %c0_i32 = arith.constant 0 : i32
    %c0_i32_0 = arith.constant 0 : i32
    %c0_i32_1 = arith.constant 0 : i32
    return %c0_i32, %c0_i32_0 : i32, i32
  }
  func.func @transform_3(%arg0: i32, %arg1: i32) -> (i32, i32) {
    %c0_i32 = arith.constant 0 : i32
    %c0_i32_0 = arith.constant 0 : i32
    %c0_i32_1 = arith.constant 0 : i32
    return %c0_i32, %c0_i32_0 : i32, i32
  }
  func.func @transform_4(%arg0: i32, %arg1: i32) -> (i32, i32) {
    %c0_i32 = arith.constant 0 : i32
    %c0_i32_0 = arith.constant 0 : i32
    %c0_i32_1 = arith.constant 0 : i32
    return %c0_i32, %c0_i32_0 : i32, i32
  }
  func.func @transform_5(%arg0: i32, %arg1: i32) -> (i32, i32) {
    %c0_i32 = arith.constant 0 : i32
    %c0_i32_0 = arith.constant 0 : i32
    %c0_i32_1 = arith.constant 0 : i32
    return %c0_i32, %c0_i32_0 : i32, i32
  }
  func.func @transform_6(%arg0: i32, %arg1: i32) -> (i32, i32) {
    %c0_i32 = arith.constant 0 : i32
    %c0_i32_0 = arith.constant 0 : i32
    return %c0_i32, %arg1 : i32, i32
  }
  func.func @transform_7(%arg0: i32, %arg1: i32) -> (i32, i32) {
    %c0_i32 = arith.constant 0 : i32
    %c0_i32_0 = arith.constant 0 : i32
    return %c0_i32, %arg1 : i32, i32
  }
  func.func @transform_8(%arg0: i32, %arg1: i32) -> (i32, i32) {
    %c0_i32 = arith.constant 0 : i32
    %c0_i32_0 = arith.constant 0 : i32
    return %arg1, %c0_i32 : i32, i32
  }
  func.func @transform_9(%arg0: i32, %arg1: i32) -> (i32, i32) {
    %c0_i32 = arith.constant 0 : i32
    %c0_i32_0 = arith.constant 0 : i32
    %c0_i32_1 = arith.constant 0 : i32
    return %c0_i32, %c0_i32_0 : i32, i32
  }
  func.func @transform_10(%arg0: i32, %arg1: i32) -> (i32, i32) {
    %c0_i32 = arith.constant 0 : i32
    %c0_i32_0 = arith.constant 0 : i32
    %c0_i32_1 = arith.constant 0 : i32
    return %c0_i32, %c0_i32_0 : i32, i32
  }
  func.func @transform_11(%arg0: i32, %arg1: i32) -> (i32, i32) {
    %c0_i32 = arith.constant 0 : i32
    %c0_i32_0 = arith.constant 0 : i32
    %c0_i32_1 = arith.constant 0 : i32
    return %c0_i32, %c0_i32_0 : i32, i32
  }
  func.func @transform_12(%arg0: i32, %arg1: i32) -> (i32, i32) {
    %c0_i32 = arith.constant 0 : i32
    %c0_i32_0 = arith.constant 0 : i32
    return %arg0, %c0_i32 : i32, i32
  }
}

</mosaic_0001>

<bundles_post_ra>
// kernel: encoder_layer.3
= control target key start
LH: loop header
LB: loop body
LE: loop exit
PB: predicated region body
PF: predicated region fallthrough
CT: control target
= control target key end

     0   :  { %8 = vsyncpa [#allocation3], 0  ;;  %s738_s0 = inlined_call_operand.hbm [shape: f32[16,32], index: 0, kind: input, shape index: {}]   ;;  %s739_s1 = inlined_call_operand.hbm [shape: bf16[32,192], index: 1, kind: input, shape index: {}]   ;;  %s740_s2 = inlined_call_operand.hbm [shape: f32[1,192], index: 2, kind: input, shape index: {}]   ;;  %s741_s3 = inlined_call_operand.vmem [shape: bf16[16,192], index: 3, kind: output, shape index: {}]  }
   0x1   :  { %10 = vsyncpa [#allocation3 + $0x1], 0 }
   0x2   :  { %11 = vsyncpa [#allocation5], 0  ;;  %s629_s12 = smov 0   ;;  %s631_s13 = smov 0  }
   0x3   :  { %s633_s14 = smov 0   ;;  %s635_s15 = smov 0  }
   0x4 LB: > { %s127_s18 = sshll.u32 %s739_s1, 4  ;;  %s653_s19 = sadd.s32 4294967295, %s603_s15   ;;  %s603_s15 = sphi %s635_s15, %s748_s15   ;;  %s599_s14 = sphi %s633_s14, %s747_s14   ;;  %s595_s13 = sphi %s631_s13, %s746_s13   ;;  %s591_s12 = sphi %s629_s12, %s745_s12   ;;  %s128_s18 = int_to_ptr.hbm [resolvable:$true] %s127_s18 }
   0x5   : > { %p376_p0 = scmp.ge.s32.totalorder %s603_s15, 1  ;;  %p38_p1 = scmp.eq.s32.totalorder %s653_s19, 0 }
   0x6   : > { %p116_p2 = scmp.lt.s32.totalorder %s603_s15, 3  ;;  %s605_s21 = smov [#allocation4]  }
   0x7   : > { %s129_s22 = sshll.u32 %s605_s21, 4  ;;  %s142_s25 = sshll.u32 %s740_s2, 4  ;;  %s130_s22 = int_to_ptr.vmem [resolvable:$true] %s129_s22  ;;  %s143_s25 = int_to_ptr.hbm [resolvable:$true] %s142_s25 }
   0x8   : > { %p658_p3 = pnand %p376_p0, %p116_p2  ;;  %s606_s26 = smov [#allocation6]  }
   0x9   : > { %s144_s27 = sshll.u32 %s606_s26, 4  ;;  %s607_s28 = smov 128   ;;  %s145_s27 = int_to_ptr.vmem [resolvable:$true] %s144_s27 }
   0xa   : > { %p423_p4 = pneg %p658_p3  ;;  %s608_s29 = smov 8  }
   0xb   : > { %s670_s30 = sadd.s32 1, %s603_s15   ;;  %s24_s5 = sadd.s32 1, %s599_s14 }
   0xc   : > { %p424_p5 = pnand %p423_p4, %p38_p1  ;;  %s21_s4 = ssub.s32 %s603_s15, %s670_s30 }
   0xd   : > { %p22_p6 = scmp.eq.s32.totalorder %s21_s4, 0  ;;  %p31_p7 = scmp.ne.s32.totalorder %s599_s14, %s595_s13 }
   0xe   : > { %426 = dma.hbm_to_vmem [thread:$0]  (!%p424_p5), %s128_s18, 512, %s130_s22, [#allocation5], %s607_s28, %s607_s28, %s608_s29  }
   0xf   : > { %429 = dma.hbm_to_vmem [thread:$0]  (!%p424_p5), %s143_s25, 32, %s145_s27, [#allocation5]  }
  0x10   : > { %p32_p8 = scmp.eq.s32.totalorder %s603_s15, 0  ;;  %p37_p9 = scmp.ne.s32.totalorder %s595_s13, %s591_s12 }
  0x11   : > { %s681_s6 = scalar_select %p22_p6, %s599_s14, %s24_s5  }
  0x12   : > { %p685_p10 = por %p38_p1, %p37_p9  ;;  %p436_p11 = scmp.lt.s32.totalorder %s603_s15, 2 }
  0x13   : > { %s155_s8 = sand.u32 1, %s599_s14   ;;  %s381_s9 = sshll.u32 %s603_s15, 3 }
  0x14   : > { %p33_p12 = por %p32_p8, %p31_p7  ;;  %s380_s10 = sshll.u32 %s155_s8, 3 }
  0x15   : > { %s163_s17 = scalar_lea.hbm %s738_s0, %s381_s9  ;;  %s159_s21 = scalar_lea.vmem [#allocation2], %s380_s10 }
  0x16   : > { %s165_s18 = sshll.u32 %s163_s17, 4  ;;  %s167_s22 = sshll.u32 %s159_s21, 4  ;;  %s166_s18 = int_to_ptr.hbm [resolvable:$true] %s165_s18  ;;  %s168_s22 = int_to_ptr.vmem [resolvable:$true] %s167_s22 }
  0x17   : > { %p695_p13 = pnand %p436_p11, %p33_p12  ;;  %s156_s23 = scalar_lea.sflag [#allocation3], %s155_s8 }
  0x18   : > { %s535_s24 = sshra.s32 %s166_s18, 4  ;;  %s542_s27 = scalar_lea.hbm %s738_s0, 16  ;;  %s536_s24 = int_to_ptr.hbm [resolvable:$true] %s535_s24 }
  0x19   : > { %s537_s15 = scalar_lea.hbm %s536_s24, 8  ;;  %p539_p2 = pneg %p695_p13 }
  0x1a   : > { %p538_p0 = scmp.ne.s32.totalorder %s536_s24, %s537_s15  ;;  %p543_p6 = scmp.lt.s32.totalorder %s536_s24, %s738_s0 }
  0x1b   : > { %p544_p7 = scmp.lt.s32.totalorder %s542_s27, %s537_s15 }
  0x1c   : > { %p540_p4 = pnand %p539_p2, %p538_p0 }
  0x1d   : > { %p545_p8 = por %p544_p7, %p543_p6 }
  0x1e   : > { %p541_p5 = pneg %p540_p4 }
  0x20   : > { %p546_p9 = pnand %p545_p8, %p541_p5 }
  0x22   : > { %549 = shalt.err (!%p546_p9)
}
  0x23   : > { %433 = dma.hbm_to_vmem [thread:$0]  (!%p695_p13), %s166_s18, 128, %s168_s22, %s156_s23  }
  0x24   : > { %176 = sbr.rel (%p658_p3) target bundleno = 189 (0xbd), region = 32  ;;  %s178_s4 = sand.u32 (!%p658_p3), 1, %s595_s13  }
  0x25   : > { %s383_s5 = sshll.u32 (!%p658_p3), %s178_s4, 3  ;;  %s179_s8 = scalar_lea.sflag (!%p658_p3), [#allocation3], %s178_s4 }
  0x26   : > { %s182_s9 = scalar_lea.vmem (!%p658_p3), [#allocation2], %s383_s5 }
  0x29   : > { %582 = dma.done.wait (%p685_p10), %s179_s8, 128  }
  0x2a   : > { %584 = vsyncadd (%p685_p10), %s179_s8, 4294967168 }
  0x2b   : > { %586 = dma.done.wait (%p38_p1), [#allocation5], 544  }
  0x2c   : > { %588 = vsyncadd (%p38_p1), [#allocation5], 4294966752  ;;  %v398_v0 = vld [vmem:[#allocation4 + $0x10] sm:$0xf]  ;;  %v412_v1 = vld [vmem:[#allocation4 + $0x14] sm:$0xf0] }
  0x2d   : > { %v411_v2 = vld [vmem:[#allocation4 + $0x14] sm:$0xf]  ;;  %v399_v3 = vor.u32 %v412_v1, %v398_v0  ;;  %v400_v4 = vld [vmem:[#allocation4 + $0x18] sm:$0xf0]  ;;  %v390_v5 = vld [vmem:[#allocation4] sm:$0xf] }
  0x2e   : > { %v410_v6 = vld [vmem:[#allocation4 + $0x4] sm:$0xf0]  ;;  %v403_v7 = vor.u32 %v411_v2, %v400_v4  ;;  %v409_v8 = vld [vmem:[#allocation4 + $0x4] sm:$0xf]  ;;  %v392_v9 = vld [vmem:[#allocation4 + $0x8] sm:$0xf0] }
  0x2f   : > { %264 = vmatpush.bf16.msra.mxu0 %v399_v3  ;;  %v391_v10 = vor.u32 %v410_v6, %v390_v5  ;;  %v222_v11 = vld [vmem:[%s182_s9] sm:$0xff]  ;;  %v395_v12 = vor.u32 %v409_v8, %v392_v9  ;;  %vm254_vm0 = vcmask 261120   ;;  %p216_p1 = scmp.lt.s32.totalorder %s653_s19, 1  ;;  %v228_v14 = vld [vmem:[#allocation6] sm:$0x3]  ;;  %vm285_vm1 = vcmask 1043456  }
  0x30   : > { %277 = vmatpush.bf16.msra.mxu1 %v403_v7  ;;  %v223_v13 = vpack.c.bf16 %v222_v11, %v222_v11  ;;  %v230_v15 = vperm.slane %v228_v14, 0  ;;  %v231_v16 = vperm.slane %v228_v14, 1  ;;  %vm286_vm2 = vcmask 523268  }
  0x31   : > { %s750_s19 = smov (!%p216_p1, %s653_s19), 1  ;;  %vm287_vm3 = vmor %vm286_vm2, %vm285_vm1 }
  0x32   : > { %s408_s20 = sshll.u32 %s750_s19, 3 }
  0x33   : > { %265 = vmatpush.bf16.msra.mxu0 %v391_v10  ;;  %s220_s11 = scalar_lea.vmem %s741_s3, %s408_s20 }
  0x34   : > { %278 = vmatpush.bf16.msra.mxu1 %v395_v12 }
  0x36   : > { %404 = vmatmul.msk.bf16.vlgmr.msra.gmra.mxu0 %vm254_vm0, %v223_v13 }
  0x37   : > { %405 = vmatmul.msk.bf16.vlgmr.msra.gmra.mxu1 %vm254_vm0, %v223_v13 }
  0xb3   : > { %v267_v17 = vpop.f32.mrf.mxu0 }
  0xb4   : > { %v268_v18 = vadd.f32 %v267_v17, %v230_v15  ;;  %v280_v19 = vpop.f32.mrf.mxu1 }
  0xb5   : > { %v281_v20 = vadd.f32 %v280_v19, %v231_v16 }
  0xb7   : > { %v284_v21 = vpack.c.bf16 %v281_v20, %v268_v18 }
  0xb9   : > { %288 = vst.msk [vmem:[%s220_s11] sm:$0xff] %vm287_vm3, %v284_v21 }
  0xbb   : > { %v269_v22 = vpop.f32.mrf.mxu0 }
  0xbc   : > { %v282_v23 = vpop.f32.mrf.mxu1 }
  0xbd PF: > { %p14_p3 = scmp.ge.s32.totalorder %s670_s30, 4   ;;  %s745_s12 = smov %s595_s13 }
  0xbe   : > { %s746_s13 = smov %s599_s14  ;;  %s747_s14 = smov %s681_s6 }
  0xbf   : > { %s748_s15 = smov %s670_s30  ;;  %16 = sbr.rel (!%p14_p3) target bundleno = 4 (0x4), region = 80 }
  0xc4   :  { %310 = vsyncpa [#allocation3], 1 }
  0xc5   :  { %312 = vsyncpa [#allocation3 + $0x1], 1 }
  0xc6   :  { %313 = vsyncpa [#allocation5], 1 }

// kernel: encoder_layer.4
= control target key start
LH: loop header
LB: loop body
LE: loop exit
PB: predicated region body
PF: predicated region fallthrough
CT: control target
= control target key end

     0   :  { %11 = vsyncpa [#allocation3], 0  ;;  %s1299_s0 = inlined_call_operand.vmem [shape: bf16[2,4,8,16], index: 0, kind: input, shape index: {}]   ;;  %s1300_s1 = inlined_call_operand.vmem [shape: bf16[2,4,8,16], index: 1, kind: input, shape index: {}]   ;;  %s1301_s2 = inlined_call_operand.vmem [shape: bf16[2,4,8,16], index: 2, kind: input, shape index: {}]   ;;  %s1302_s3 = inlined_call_operand.vmem [shape: s32[2,8,8], index: 3, kind: input, shape index: {}]   ;;  %s1303_s4 = inlined_call_operand.hbm [shape: f32[2,4,8,8], index: 4, kind: output, shape index: {0}]   ;;  %s1304_s5 = inlined_call_operand.vmem [shape: bf16[2,4,8,16], index: 5, kind: output, shape index: {1}]  }
   0x1   :  { %13 = vsyncpa [#allocation3 + $0x1], 0  ;;  %s1129_s18 = smov 0   ;;  %s1131_s19 = smov 0  }
   0x2   :  { %s1133_s20 = smov 0   ;;  %s1135_s21 = smov 0  }
   0x3   :  { %s1137_s22 = smov 0   ;;  %s1139_s23 = smov 0  }
   0x4 LB: > { %s911_s24 = sadd.s32 4294967295, %s1095_s23   ;;  %s912_s25 = sadd.s32 4294967294, %s1095_s23   ;;  %s1095_s23 = sphi %s1139_s23, %s19_s23   ;;  %s1091_s22 = sphi %s1137_s22, %s1311_s22   ;;  %s1087_s21 = sphi %s1135_s21, %s1310_s21   ;;  %s1083_s20 = sphi %s1133_s20, %s1309_s20   ;;  %s1079_s19 = sphi %s1131_s19, %s1308_s19   ;;  %s1075_s18 = sphi %s1129_s18, %s1307_s18  }
   0x5   : > { %s38_s26 = sadd.s32 1, %s1091_s22  ;;  %s163_s27 = sadd.s32 1, %s1083_s20 }
   0x6   : > { %p40_p0 = scmp.ge.s32.totalorder %s38_s26, 2  ;;  %p173_p1 = scmp.ne.s32.totalorder %s1083_s20, %s1079_s19 }
   0x7   : > { %p174_p2 = scmp.eq.s32.totalorder %s911_s24, 1  ;;  %p179_p3 = scmp.ne.s32.totalorder %s1079_s19, %s1075_s18 }
   0x8   : > { %s1313_s26 = smov (%p40_p0, %s38_s26), 0  ;;  %p180_p5 = scmp.eq.s32.totalorder %s912_s25, 1 }
   0x9   : > { %p1169_p4 = por %p174_p2, %p173_p1  ;;  %s156_s29 = ssub.s32 %s1091_s22, %s1313_s26 }
   0xa   : > { %p915_p6 = scmp.ge.s32.totalorder %s1095_s23, 1  ;;  %p161_p7 = scmp.eq.s32.totalorder %s156_s29, 0 }
   0xb   : > { %p1176_p8 = por %p180_p5, %p179_p3  ;;  %p280_p9 = scmp.lt.s32.totalorder %s1095_s23, 3 }
   0xc   : > { %s1182_s6 = scalar_select %p161_p7, %s1083_s20, %s163_s27  }
   0xd   : > { %p281_p10 = pnand %p915_p6, %p280_p9 }
   0xe   : > { %p353_p11 = scmp.lt.s32.totalorder (!%p281_p10), %s1087_s21, 1 }
   0xf   : > { %284 = sbr.rel (%p281_p10) target bundleno = 580 (0x244), region = 36 }
  0x14   : > { %s354_s7 = scalar_select %p353_p11, %s1087_s21, 1  ;;  %vm420_vm0 = vcmask 130048   ;;  %vm504_vm2 = vcmask 64512   ;;  %vm612_vm3 = vcmask 1043456  }
  0x16   : > { %s1186_s8 = sshll.u32 %s354_s7, 4  ;;  %s923_s15 = sshll.u32 %s354_s7, 3 }
  0x17   : > { %s373_s11 = scalar_lea.vmem %s1300_s1, %s1186_s8  ;;  %s363_s14 = scalar_lea.vmem %s1299_s0, %s1186_s8 }
  0x18   : > { %v411_v0 = vld [vmem:[%s373_s11] sm:$0xf]  ;;  %v413_v1 = vld [vmem:[%s373_s11 + $0x8] sm:$0xf]  ;;  %v414_v2 = vld [vmem:[%s373_s11 + $0xc] sm:$0xf]  ;;  %s391_s24 = scalar_lea.vmem %s1302_s3, %s923_s15  ;;  %s383_s29 = scalar_lea.vmem %s1301_s2, %s1186_s8 }
  0x19   : > { %v425_v3 = vsel %vm420_vm0, %v411_v0, 0  ;;  %v463_v4 = vsel %vm420_vm0, %v413_v1, 0  ;;  %v482_v5 = vsel %vm420_vm0, %v414_v2, 0  ;;  %v412_v6 = vld [vmem:[%s373_s11 + $0x4] sm:$0xf]  ;;  %s335_s7 = sand.u32 1, %s1079_s19  }
  0x1a   : > { %434 = vmatpush.bf16.xpose.msra.mxu0 %v425_v3  ;;  %472 = vmatpush.bf16.xpose.msra.mxu2 %v463_v4  ;;  %v444_v7 = vsel %vm420_vm0, %v412_v6, 0  ;;  %v407_v8 = vld [vmem:[%s363_s14] sm:$0xf]  ;;  %v409_v9 = vld [vmem:[%s363_s14 + $0x8] sm:$0xf]  ;;  %s916_s9 = sshll.u32 %s335_s7, 5 }
  0x1b   : > { %491 = vmatpush.bf16.xpose.msra.mxu3 %v482_v5  ;;  %453 = vmatpush.bf16.xpose.msra.mxu1 %v444_v7  ;;  %v410_v10 = vld [vmem:[%s363_s14 + $0xc] sm:$0xf]  ;;  %v408_v11 = vld [vmem:[%s363_s14 + $0x4] sm:$0xf]  ;;  %v415_v49 = vld [vmem:[%s383_s29] sm:$0xf] }
  0x1c   : > { %v419_v12 = vld [vmem:[%s391_s24] sm:$0xff]  ;;  %v614_v50 = vsel %vm612_vm3, %v415_v49, 0  ;;  %v417_v51 = vld [vmem:[%s383_s29 + $0x8] sm:$0xf]  ;;  %v418_v55 = vld [vmem:[%s383_s29 + $0xc] sm:$0xf] }
  0x1d   : > { %vm497_vm1 = vcmp.ne.s32.totalorder %v419_v12, 0  ;;  %v652_v52 = vsel %vm612_vm3, %v417_v51, 0  ;;  %v416_v53 = vld [vmem:[%s383_s29 + $0x4] sm:$0xf]  ;;  %v671_v57 = vsel %vm612_vm3, %v418_v55, 0  ;;  %s1239_s10 = scalar_lea.vmem [#allocation2], %s916_s9 }
  0x1e   : > { %v633_v54 = vsel %vm612_vm3, %v416_v53, 0  ;;  %s943_s11 = sshll.u32 %s1087_s21, 5  ;;  %s723_s15 = sshll.u32 %s1239_s10, 4  ;;  %s724_s15 = int_to_ptr.vmem [resolvable:$true] %s723_s15 }
  0x1f   : > { %s722_s14 = scalar_lea.hbm %s1303_s4, %s943_s11  ;;  %s696_s17 = scalar_lea.sflag [#allocation3], %s335_s7 }
  0x20   : > { %s725_s16 = sshll.u32 %s722_s14, 4  ;;  %s1037_s21 = scalar_lea.hbm %s1303_s4, 64  ;;  %s726_s16 = int_to_ptr.hbm [resolvable:$true] %s725_s16 }
  0x21   : > { %926 = vmatmul.msk.bf16.vlgmr.msra.gmra.mxu0 %vm420_vm0, %v407_v8  ;;  %928 = vmatmul.msk.bf16.vlgmr.msra.gmra.mxu2 %vm420_vm0, %v409_v9  ;;  %s1031_s24 = sshra.s32 %s726_s16, 4  ;;  %s1032_s24 = int_to_ptr.hbm [resolvable:$true] %s1031_s24 }
  0x22   : > { %929 = vmatmul.msk.bf16.vlgmr.msra.gmra.mxu3 %vm420_vm0, %v410_v10  ;;  %927 = vmatmul.msk.bf16.vlgmr.msra.gmra.mxu1 %vm420_vm0, %v408_v11  ;;  %s1033_s25 = scalar_lea.hbm %s1032_s24, 32  ;;  %p1038_p1 = scmp.lt.s32.totalorder %s1032_s24, %s1303_s4 }
  0x23   : > { %623 = vmatpush.bf16.msrb.mxu0 %v614_v50  ;;  %661 = vmatpush.bf16.msrb.mxu2 %v652_v52  ;;  %p1034_p12 = scmp.ne.s32.totalorder %s1032_s24, %s1033_s25  ;;  %p1039_p2 = scmp.lt.s32.totalorder %s1037_s21, %s1033_s25 }
  0x24   : > { %642 = vmatpush.bf16.msrb.mxu1 %v633_v54  ;;  %680 = vmatpush.bf16.msrb.mxu3 %v671_v57 }
  0x25   : > { %p1035_p13 = pnand %p1034_p12, %p1169_p4  ;;  %p1040_p3 = por %p1039_p2, %p1038_p1 }
  0x27   : > { %p1036_p0 = pneg %p1035_p13 }
  0x29   : > { %p1041_p5 = pnand %p1040_p3, %p1036_p0 }
  0x9e   : > { %v436_v13 = vpop.f32.mrf.mxu0 }
  0x9f   : > { %v500_v14 = vsel %vm497_vm1, -1e+09, %v436_v13  ;;  %v455_v16 = vpop.f32.mrf.mxu1 }
  0xa0   : > { %v505_v15 = vsel %vm504_vm2, %v500_v14, -inf  ;;  %v501_v17 = vsel %vm497_vm1, -1e+09, %v455_v16 }
  0xa1   : > { %506 = vmax.xlane.f32.xlu1 %v505_v15  ;;  %v508_v22 = vsel %vm504_vm2, %v501_v17, -inf }
  0xa4   : > { %v474_v18 = vpop.f32.mrf.mxu2 }
  0xa5   : > { %v502_v19 = vsel %vm497_vm1, -1e+09, %v474_v18  ;;  %v493_v20 = vpop.f32.mrf.mxu3 }
  0xa6   : > { %v511_v21 = vsel %vm504_vm2, %v502_v19, -inf  ;;  %v438_v23 = vpop.f32.mrf.mxu0  ;;  %v503_v25 = vsel %vm497_vm1, -1e+09, %v493_v20 }
  0xa7   : > { %512 = vmax.xlane.f32.xlu0 %v511_v21  ;;  %v457_v24 = vpop.f32.mrf.mxu1  ;;  %v514_v27 = vsel %vm504_vm2, %v503_v25, -inf }
  0xa9   : > { %509 = vmax.xlane.f32.xlu1 %v508_v22 }
  0xac   : > { %v476_v26 = vpop.f32.mrf.mxu2 }
  0xad   : > { %v495_v28 = vpop.f32.mrf.mxu3 }
  0xaf   : > { %515 = vmax.xlane.f32.xlu0 %v514_v27 }
 0x114   : > { %v507_v29 = vpop.xlane.xlu1 %506 }
 0x115   : > { %v517_v30 = vsub.f32 %v500_v14, %v507_v29 }
 0x117   : > { %v521_v31 = vmul.f32 1.442695, %v517_v30 }
 0x119   : > { %1001 = vpow2.f32 %v521_v31 }
 0x11a   : > { %v513_v32 = vpop.xlane.xlu0 %512 }
 0x11b   : > { %v519_v33 = vsub.f32 %v502_v19, %v513_v32 }
 0x11c   : > { %v510_v34 = vpop.xlane.xlu1 %509 }
 0x11d   : > { %v525_v35 = vmul.f32 1.442695, %v519_v33  ;;  %v518_v36 = vsub.f32 %v501_v17, %v510_v34 }
 0x11f   : > { %v1215_v37 = vpop.eup %1001  ;;  %1003 = vpow2.f32 %v525_v35  ;;  %v523_v38 = vmul.f32 1.442695, %v518_v36 }
 0x120   : > { %v529_v39 = vsel %vm504_vm2, %v1215_v37, 0.0 }
 0x121   : > { %1005 = vpow2.f32 %v523_v38  ;;  %530 = vadd.xlane.f32.xlu0 %v529_v39 }
 0x122   : > { %v516_v40 = vpop.xlane.xlu0 %515 }
 0x123   : > { %v520_v41 = vsub.f32 %v503_v25, %v516_v40 }
 0x125   : > { %v1219_v42 = vpop.eup %1003  ;;  %v527_v43 = vmul.f32 1.442695, %v520_v41 }
 0x126   : > { %v535_v44 = vsel %vm504_vm2, %v1219_v42, 0.0 }
 0x127   : > { %v1223_v45 = vpop.eup %1005  ;;  %1007 = vpow2.f32 %v527_v43  ;;  %536 = vadd.xlane.f32.xlu2 %v535_v44 }
 0x128   : > { %v532_v46 = vsel %vm504_vm2, %v1223_v45, 0.0 }
 0x129   : > { %533 = vadd.xlane.f32.xlu1 %v532_v46 }
 0x12d   : > { %v1227_v47 = vpop.eup %1007 }
 0x12e   : > { %v538_v48 = vsel %vm504_vm2, %v1227_v47, 0.0 }
 0x12f   : > { %539 = vadd.xlane.f32.xlu2 %v538_v48 }
 0x194   : > { %v531_v56 = vpop.xlane.xlu0 %530 }
 0x195   : > { %1009 = vrcp.f32 %v531_v56  ;;  %v552_v63 = vand.u32 2147483648, %v531_v56  ;;  %v550_v1 = vand.u32 2147483647, %v531_v56  ;;  %vm546_vm5 = vweird.f32 %v531_v56 }
 0x197   : > { %v553_v7 = vor.u32 1.1754944e-38, %v552_v63  ;;  %vm551_vm7 = vcmp.eq.f32.partialorder %v550_v1, 8.507059e+37 }
 0x19a   : > { %v537_v58 = vpop.xlane.xlu2 %536 }
 0x19b   : > { %v1010_v59 = vpop.eup %1009  ;;  %1011 = vrcp.f32 %v537_v58  ;;  %v578_v12 = vand.u32 2147483647, %v537_v58  ;;  %v580_v13 = vand.u32 2147483648, %v537_v58  ;;  %vm574_vm9 = vweird.f32 %v537_v58 }
 0x19c   : > { %v542_v60 = vmul.f32 %v1010_v59, %v531_v56  ;;  %v534_v61 = vpop.xlane.xlu1 %533  ;;  %vm547_vm4 = vweird.f32 %v1010_v59 }
 0x19d   : > { %1013 = vrcp.f32 %v534_v61  ;;  %vm548_vm6 = vmor %vm546_vm5, %vm547_vm4  ;;  %v564_v17 = vand.u32 2147483647, %v534_v61  ;;  %v566_v18 = vand.u32 2147483648, %v534_v61  ;;  %vm579_vm12 = vcmp.eq.f32.partialorder %v578_v12, 8.507059e+37 }
 0x19e   : > { %v543_v62 = vsub.f32 1.0, %v542_v60  ;;  %v581_v23 = vor.u32 1.1754944e-38, %v580_v13  ;;  %vm560_vm13 = vweird.f32 %v534_v61 }
 0x19f   : > { %v567_v27 = vor.u32 1.1754944e-38, %v566_v18  ;;  %vm565_vm15 = vcmp.eq.f32.partialorder %v564_v17, 8.507059e+37 }
 0x1a0   : > { %v544_v0 = vmul.f32 %v1010_v59, %v543_v62 }
 0x1a1   : > { %v1012_v2 = vpop.eup %1011 }
 0x1a2   : > { %v545_v3 = vadd.f32 %v1010_v59, %v544_v0  ;;  %v570_v4 = vmul.f32 %v1012_v2, %v537_v58  ;;  %v540_v5 = vpop.xlane.xlu2 %539  ;;  %vm575_vm8 = vweird.f32 %v1012_v2 }
 0x1a3   : > { %v1014_v6 = vpop.eup %1013  ;;  %1015 = vrcp.f32 %v540_v5  ;;  %vm576_vm11 = vmor %vm574_vm9, %vm575_vm8  ;;  %v592_v33 = vand.u32 2147483647, %v540_v5  ;;  %v594_v34 = vand.u32 2147483648, %v540_v5  ;;  %vm588_vm1 = vweird.f32 %v540_v5 }
 0x1a4   : > { %v549_v8 = vsel %vm548_vm6, %v1010_v59, %v545_v3  ;;  %v571_v9 = vsub.f32 1.0, %v570_v4  ;;  %v556_v10 = vmul.f32 %v1014_v6, %v534_v61  ;;  %vm561_vm10 = vweird.f32 %v1014_v6 }
 0x1a5   : > { %v554_v11 = vsel %vm551_vm7, %v553_v7, %v549_v8  ;;  %vm562_vm14 = vmor %vm560_vm13, %vm561_vm10  ;;  %v595_v40 = vor.u32 1.1754944e-38, %v594_v34  ;;  %vm593_vm4 = vcmp.eq.f32.partialorder %v592_v33, 8.507059e+37 }
 0x1a6   : > { %v572_v14 = vmul.f32 %v1012_v2, %v571_v9  ;;  %v557_v15 = vsub.f32 1.0, %v556_v10  ;;  %v597_v16 = vmul.f32 %v1215_v37, %v554_v11 }
 0x1a8   : > { %v573_v19 = vadd.f32 %v1012_v2, %v572_v14  ;;  %v558_v20 = vmul.f32 %v1014_v6, %v557_v15  ;;  %601 = vst.msk [vmem:[%s1239_s10] sm:$0xff] %vm504_vm2, %v597_v16  ;;  %v605_v21 = vpack.c.bf16 %v597_v16, %v597_v16 }
 0x1a9   : > { %v1016_v22 = vpop.eup %1015 }
 0x1aa   : > { %v577_v24 = vsel %vm576_vm11, %v1012_v2, %v573_v19  ;;  %v559_v25 = vadd.f32 %v1014_v6, %v558_v20  ;;  %v584_v26 = vmul.f32 %v1016_v22, %v540_v5  ;;  %930 = vmatmul.msk.bf16.vlgmr.msrb.gmra.mxu0 %vm504_vm2, %v605_v21  ;;  %vm589_vm0 = vweird.f32 %v1016_v22 }
 0x1ab   : > { %v582_v28 = vsel %vm579_vm12, %v581_v23, %v577_v24  ;;  %vm590_vm3 = vmor %vm588_vm1, %vm589_vm0 }
 0x1ac   : > { %v563_v29 = vsel %vm562_vm14, %v1014_v6, %v559_v25  ;;  %v585_v30 = vsub.f32 1.0, %v584_v26  ;;  %v599_v31 = vmul.f32 %v1219_v42, %v582_v28 }
 0x1ad   : > { %v568_v32 = vsel %vm565_vm15, %v567_v27, %v563_v29 }
 0x1ae   : > { %v586_v35 = vmul.f32 %v1016_v22, %v585_v30  ;;  %603 = vst.msk [vmem:[%s1239_s10 + $0x10] sm:$0xff] %vm504_vm2, %v599_v31  ;;  %v607_v36 = vpack.c.bf16 %v599_v31, %v599_v31  ;;  %v598_v37 = vmul.f32 %v1223_v45, %v568_v32 }
 0x1b0   : > { %v587_v38 = vadd.f32 %v1016_v22, %v586_v35  ;;  %932 = vmatmul.msk.bf16.vlgmr.msrb.gmra.mxu2 %vm504_vm2, %v607_v36  ;;  %602 = vst.msk [vmem:[%s1239_s10 + $0x8] sm:$0xff] %vm504_vm2, %v598_v37  ;;  %v606_v39 = vpack.c.bf16 %v598_v37, %v598_v37 }
 0x1b2   : > { %v591_v41 = vsel %vm590_vm3, %v1016_v22, %v587_v38  ;;  %931 = vmatmul.msk.bf16.vlgmr.msrb.gmra.mxu1 %vm504_vm2, %v606_v39 }
 0x1b3   : > { %v596_v42 = vsel %vm593_vm4, %v595_v40, %v591_v41 }
 0x1b4   : > { %v600_v43 = vmul.f32 %v1227_v47, %v596_v42 }
 0x1b6   : > { %604 = vst.msk [vmem:[%s1239_s10 + $0x18] sm:$0xff] %vm504_vm2, %v600_v43  ;;  %v608_v44 = vpack.c.bf16 %v600_v43, %v600_v43 }
 0x1b8   : > { %933 = vmatmul.msk.bf16.vlgmr.msrb.gmra.mxu3 %vm504_vm2, %v608_v44 }
 0x1b9   : > { %1044 = shalt.err (!%p1041_p5)
}
 0x1ba   : > { %s1097_s7 = smov 128   ;;  %s1098_s10 = smov 8   ;;  %vm690_vm2 = vcmask 125952  }
 0x1bb   : > { %944 = dma.vmem_to_hbm [thread:$0]  (%p1169_p4), %s724_s15, 512, %s726_s16, %s696_s17, %s1097_s7, %s1097_s7, %s1098_s10  }
 0x1bc   : > { %s404_s14 = scalar_lea.vmem %s1304_s5, %s1186_s8 }
 0x227   : > { %v625_v45 = vpop.f32.mrf.mxu0 }
 0x228   : > { %v686_v46 = vpack.c.bf16 %v625_v45, %v625_v45 }
 0x22a   : > { %691 = vst.msk [vmem:[%s404_s14] sm:$0xf] %vm690_vm2, %v686_v46 }
 0x22f   : > { %v627_v47 = vpop.f32.mrf.mxu0  ;;  %v644_v48 = vpop.f32.mrf.mxu1 }
 0x230   : > { %v687_v49 = vpack.c.bf16 %v644_v48, %v644_v48 }
 0x232   : > { %692 = vst.msk [vmem:[%s404_s14 + $0x4] sm:$0xf] %vm690_vm2, %v687_v49 }
 0x233   : > { %v663_v50 = vpop.f32.mrf.mxu2 }
 0x234   : > { %v688_v51 = vpack.c.bf16 %v663_v50, %v663_v50 }
 0x236   : > { %693 = vst.msk [vmem:[%s404_s14 + $0x8] sm:$0xf] %vm690_vm2, %v688_v51 }
 0x237   : > { %v646_v52 = vpop.f32.mrf.mxu1 }
 0x23b   : > { %v665_v53 = vpop.f32.mrf.mxu2  ;;  %v682_v54 = vpop.f32.mrf.mxu3 }
 0x23c   : > { %v689_v55 = vpack.c.bf16 %v682_v54, %v682_v54 }
 0x23e   : > { %694 = vst.msk [vmem:[%s404_s14 + $0xc] sm:$0xf] %vm690_vm2, %v689_v55 }
 0x243   : > { %v684_v56 = vpop.f32.mrf.mxu3 }
 0x244 PF: > { %p950_p4 = scmp.ge.s32.totalorder %s1095_s23, 2  ;;  %s744_s28 = sand.u32 1, %s1075_s18  }
 0x245   : > { %s745_s8 = scalar_lea.sflag [#allocation3], %s744_s28 }
 0x246   : > { %p947_p6 = pnand %p950_p4, %p1176_p8 }
 0x248   : > { %p948_p7 = pneg %p947_p6 }
 0x24a   : > { %1070 = dma.done.wait (%p948_p7), %s745_s8, 512  }
 0x24b   : > { %1072 = vsyncadd (%p948_p7), %s745_s8, 4294966784  ;;  %s19_s23 = sadd.s32 1, %s1095_s23   ;;  %s1307_s18 = smov %s1079_s19 }
 0x24c   : > { %p16_p9 = scmp.ge.s32.totalorder %s19_s23, 4   ;;  %s1308_s19 = smov %s1083_s20 }
 0x24d   : > { %s1309_s20 = smov %s1182_s6  ;;  %s1310_s21 = smov %s1091_s22 }
 0x24e   : > { %s1311_s22 = smov %s1313_s26  ;;  %18 = sbr.rel (!%p16_p9) target bundleno = 4 (0x4), region = 92 }
 0x253   :  { %766 = vsyncpa [#allocation3], 1 }
 0x254   :  { %768 = vsyncpa [#allocation3 + $0x1], 1 }

// kernel: encoder_layer.5
= control target key start
LH: loop header
LB: loop body
LE: loop exit
PB: predicated region body
PF: predicated region fallthrough
CT: control target
= control target key end

     0   :  { %17 = vsyncpa [#allocation5], 0  ;;  %s1352_s0 = inlined_call_operand.vmem [shape: bf16[16,64], index: 0, kind: input, shape index: {}]   ;;  %s1353_s1 = inlined_call_operand.vmem [shape: f32[16,32], index: 1, kind: input, shape index: {}]   ;;  %s1354_s2 = inlined_call_operand.vmem [shape: bf16[64,32], index: 2, kind: input, shape index: {}]   ;;  %s1355_s3 = inlined_call_operand.vmem [shape: f32[1,32], index: 3, kind: input, shape index: {}]   ;;  %s1356_s4 = inlined_call_operand.vmem [shape: f32[1,32], index: 4, kind: input, shape index: {}]   ;;  %s1357_s5 = inlined_call_operand.vmem [shape: f32[1,32], index: 5, kind: input, shape index: {}]   ;;  %s1358_s6 = inlined_call_operand.vmem [shape: bf16[32,64], index: 6, kind: input, shape index: {}]   ;;  %s1359_s7 = inlined_call_operand.vmem [shape: f32[1,64], index: 7, kind: input, shape index: {}]   ;;  %s1360_s8 = inlined_call_operand.vmem [shape: bf16[64,32], index: 8, kind: input, shape index: {}]   ;;  %s1361_s9 = inlined_call_operand.vmem [shape: f32[1,32], index: 9, kind: input, shape index: {}]   ;;  %s1362_s10 = inlined_call_operand.vmem [shape: f32[1,32], index: 10, kind: input, shape index: {}]   ;;  %s1363_s11 = inlined_call_operand.vmem [shape: f32[1,32], index: 11, kind: input, shape index: {}]   ;;  %s1364_s12 = inlined_call_operand.hbm [shape: f32[16,32], index: 12, kind: output, shape index: {}]  }
   0x1   :  { %19 = vsyncpa [#allocation5 + $0x1], 0  ;;  %s1172_s21 = smov 0   ;;  %s1174_s22 = smov 0  }
   0x2   :  { %s1176_s23 = smov 0   ;;  %s1178_s24 = smov 0  }
   0x3   :  { %s1180_s25 = smov 0   ;;  %s1182_s26 = smov 0  }
   0x4 LB: > { %1369 = sst [smem:[#allocation7_spill]] %s1091_s23  ;;  %s885_s27 = sadd.s32 4294967295, %s1103_s26   ;;  %s1103_s26 = sphi %s1182_s26, %s25_s26   ;;  %s1099_s25 = sphi %s1180_s25, %s1380_s25   ;;  %s1095_s24 = sphi %s1178_s24, %s1379_s24   ;;  %s1091_s23 = sphi %s1176_s23, %s1378_s23   ;;  %s1087_s22 = sphi %s1174_s22, %s1382_s22   ;;  %s1083_s21 = sphi %s1172_s21, %s1381_s21  }
   0x5   : > { %1370 = sst [smem:[#allocation8_spill]] %s1099_s25  ;;  %s886_s28 = sadd.s32 4294967294, %s1103_s26  }
   0x6   : > { %s37_s29 = sadd.s32 1, %s1099_s25  ;;  %s321_s30 = sadd.s32 1, %s1091_s23 }
   0x7   : > { %p39_p0 = scmp.ge.s32.totalorder %s37_s29, 2  ;;  %p331_p1 = scmp.ne.s32.totalorder %s1091_s23, %s1087_s22 }
   0x8   : > { %p332_p2 = scmp.eq.s32.totalorder %s885_s27, 1  ;;  %p337_p3 = scmp.ne.s32.totalorder %s1087_s22, %s1083_s21 }
   0x9   : > { %s1384_s29 = smov (%p39_p0, %s37_s29), 0  ;;  %p338_p5 = scmp.eq.s32.totalorder %s886_s28, 1 }
   0xa   : > { %1371 = sst [smem:[#allocation9_spill]] %s1384_s29  ;;  %p1212_p4 = por %p332_p2, %p331_p1 }
   0xb   : > { %s318_s14 = ssub.s32 %s1099_s25, %s1384_s29  ;;  %p892_p6 = scmp.ge.s32.totalorder %s1103_s26, 1 }
   0xc   : > { %p319_p7 = scmp.eq.s32.totalorder %s318_s14, 0  ;;  %p1219_p8 = por %p338_p5, %p337_p3 }
   0xd   : > { %p413_p9 = scmp.lt.s32.totalorder %s1103_s26, 3 }
   0xe   : > { %s1373_s15 = scalar_select %p1219_p8, 1, 0 }
   0xf   : > { %s1225_s16 = scalar_select %p319_p7, %s1091_s23, %s321_s30  }
  0x10   : > { %1374 = sst [smem:[#allocation10_spill]] %s1373_s15  ;;  %p414_p10 = pnand %p892_p6, %p413_p9 }
  0x11   : > { %1375 = sst [smem:[#allocation11_spill]] %s1225_s16  ;;  %p470_p11 = scmp.lt.s32.totalorder (!%p414_p10), %s1095_s24, 1 }
  0x12   : > { %417 = sbr.rel (%p414_p10) target bundleno = 1015 (0x3f7), region = 68  ;;  %s467_s25 = sand.u32 (!%p414_p10), 1, %s1087_s22  }
  0x13   : > { %s940_s20 = sshll.u32 (!%p414_p10), %s1095_s24, 3  ;;  %s749_s18 = scalar_lea.sflag (!%p414_p10), [#allocation5], %s467_s25 }
  0x14   : > { %s1045_s23 = scalar_lea.hbm (!%p414_p10), %s1364_s12, 16 }
  0x17   : > { %v946_v0 = vld [vmem:[%s1354_s2 + $0x18] sm:$0xff]  ;;  %v945_v1 = vld [vmem:[%s1354_s2 + $0x10] sm:$0xff]  ;;  %s471_s27 = scalar_select %p470_p11, %s1095_s24, 1  ;;  %v944_v2 = vld [vmem:[%s1354_s2 + $0x8] sm:$0xff]  ;;  %vm534_vm0 = vcmask 523264   ;;  %vm554_vm1 = vcmask 261120  }
  0x18   : > { %542 = vmatpush.bf16.msra.mxu0 %v946_v0  ;;  %v943_v3 = vld [vmem:[%s1354_s2] sm:$0xff]  ;;  %v1105_v12 = vmov 32.0   ;;  %v948_v24 = vld [vmem:[%s1358_s6 + $0x8] sm:$0xff]  ;;  %vm594_vm6 = vcmask 257024   ;;  %v952_v43 = vld [vmem:[%s1360_s8 + $0x18] sm:$0xff]  ;;  %v1106_v47 = vmov 0.0  }
  0x19   : > { %s894_s30 = sshll.u32 %s471_s27, 2  ;;  %s895_s19 = sshll.u32 %s471_s27, 3  ;;  %v1010_v5 = vld [vmem:[%s1355_s3] ss:$0 sm:$0xff]  ;;  %1017 = vrcp.f32 %v1105_v12  ;;  %628 = vmatpush.bf16.msra.mxu1 %v948_v24  ;;  %686 = vmatpush.bf16.msra.mxu2 %v952_v43  ;;  %v951_v44 = vld [vmem:[%s1360_s8 + $0x10] sm:$0xff]  ;;  %v950_v45 = vld [vmem:[%s1360_s8 + $0x8] sm:$0xff] }
  0x1a   : > { %s473_s16 = scalar_lea.vmem %s1352_s0, %s894_s30  ;;  %s477_s15 = scalar_lea.vmem %s1353_s1, %s895_s19  ;;  %v947_v26 = vld [vmem:[%s1358_s6] sm:$0xff] }
  0x1b   : > { %v496_v4 = vld [vmem:[%s473_s16] sm:$0xf]  ;;  %s893_s16 = sshll.u32 %s467_s25, 3 }
  0x1c   : > { %543 = vmatpush.bf16.msra.mxu0 %v945_v1  ;;  %v497_v7 = vld [vmem:[%s477_s15] sm:$0xff]  ;;  %s1286_s27 = scalar_lea.vmem [#allocation4], %s893_s16  ;;  %s759_s15 = scalar_lea.hbm %s1364_s12, %s940_s20 }
  0x1d   : > { %629 = vmatpush.bf16.msra.mxu1 %v947_v26  ;;  %v1011_v35 = vld [vmem:[%s1356_s4] ss:$0 sm:$0xff]  ;;  %687 = vmatpush.bf16.msra.mxu2 %v951_v44  ;;  %596 = vst.msk [vmem:[%s1286_s27] sm:$0xff] %vm554_vm1, %v1106_v47  ;;  %s761_s24 = sshll.u32 %s1286_s27, 4  ;;  %s763_s17 = sshll.u32 %s759_s15, 4  ;;  %s762_s24 = int_to_ptr.vmem [resolvable:$true] %s761_s24  ;;  %s764_s17 = int_to_ptr.hbm [resolvable:$true] %s763_s17 }
  0x1e   : > { %v1012_v37 = vld [vmem:[%s1357_s5] ss:$0 sm:$0xff]  ;;  %s1039_s19 = sshra.s32 %s764_s17, 4  ;;  %s1040_s19 = int_to_ptr.hbm [resolvable:$true] %s1039_s19 }
  0x1f   : > { %v1018_v13 = vpop.eup %1017  ;;  %v949_v46 = vld [vmem:[%s1360_s8] sm:$0xff]  ;;  %s1041_s20 = scalar_lea.hbm %s1040_s19, 8  ;;  %p1046_p1 = scmp.lt.s32.totalorder %s1040_s19, %s1364_s12 }
  0x20   : > { %544 = vmatpush.bf16.msra.mxu0 %v944_v2  ;;  %v559_v14 = vmul.f32 32.0, %v1018_v13  ;;  %vm563_vm2 = vweird.f32 %v1018_v13  ;;  %v1013_v48 = vld [vmem:[%s1359_s7] ss:$0 sm:$0xff]  ;;  %p1042_p12 = scmp.ne.s32.totalorder %s1040_s19, %s1041_s20  ;;  %p1047_p2 = scmp.lt.s32.totalorder %s1045_s23, %s1041_s20 }
  0x21   : > { %688 = vmatpush.bf16.msra.mxu2 %v950_v45  ;;  %v1014_v1 = vld [vmem:[%s1361_s9] ss:$0 sm:$0xff] }
  0x22   : > { %v560_v15 = vsub.f32 1.0, %v559_v14  ;;  %v1016_v24 = vld [vmem:[%s1363_s11] ss:$0 sm:$0xff]  ;;  %p1043_p13 = pnand %p1042_p12, %p1212_p4  ;;  %p1048_p3 = por %p1047_p2, %p1046_p1 }
  0x24   : > { %545 = vmatpush.bf16.msra.mxu0 %v943_v3  ;;  %v561_v16 = vmul.f32 %v1018_v13, %v560_v15  ;;  %v644_v62 = vld [vmem:[%s1286_s27] sm:$0xff]  ;;  %p1044_p0 = pneg %p1043_p13 }
  0x25   : > { %689 = vmatpush.bf16.msra.mxu2 %v949_v46 }
  0x26   : > { %v562_v17 = vadd.f32 %v1018_v13, %v561_v16  ;;  %p1049_p5 = pnand %p1048_p3, %p1044_p0 }
  0x27   : > { %912 = vmatmul.msk.bf16.vlgmr.msra.gmra.mxu0 %vm534_vm0, %v496_v4 }
  0x28   : > { %v1252_v18 = vsel %vm563_vm2, %v1018_v13, %v562_v17 }
  0xa4   : > { %v547_v6 = vpop.f32.mrf.mxu0 }
  0xa5   : > { %v548_v8 = vadd.f32 %v1010_v5, %v547_v6 }
  0xa7   : > { %v551_v9 = vadd.f32 %v548_v8, %v497_v7 }
  0xa9   : > { %v555_v10 = vsel %vm554_vm1, %v551_v9, 0.0 }
  0xaa   : > { %556 = vadd.xlane.f32.xlu0 %v555_v10 }
  0xac   : > { %v549_v11 = vpop.f32.mrf.mxu0 }
 0x11d   : > { %v557_v19 = vpop.xlane.xlu0 %556 }
 0x11e   : > { %v565_v20 = vmul.f32 %v1252_v18, %v557_v19 }
 0x120   : > { %v566_v21 = vsub.f32 %v551_v9, %v565_v20 }
 0x122   : > { %v567_v22 = vmul.f32 %v566_v21, %v566_v21 }
 0x124   : > { %v568_v23 = vsel %vm554_vm1, %v567_v22, 0.0 }
 0x125   : > { %569 = vadd.xlane.f32.xlu0 %v568_v23  ;;  %v1015_v23 = vld [vmem:[%s1362_s10] ss:$0 sm:$0xff] }
 0x198   : > { %v570_v25 = vpop.xlane.xlu0 %569 }
 0x199   : > { %v571_v27 = vmul.f32 %v570_v25, %v1252_v18 }
 0x19b   : > { %v572_v28 = vadd.f32 1e-05, %v571_v27 }
 0x19d   : > { %1019 = vrsqrt.f32 %v572_v28  ;;  %vm579_vm4 = vweird.f32 %v572_v28 }
 0x1a3   : > { %v1020_v29 = vpop.eup %1019 }
 0x1a4   : > { %v574_v30 = vmul.f32 %v1020_v29, %v572_v28  ;;  %vm580_vm3 = vweird.f32 %v1020_v29 }
 0x1a5   : > { %vm581_vm5 = vmor %vm579_vm4, %vm580_vm3 }
 0x1a6   : > { %v575_v31 = vmul.f32 %v1020_v29, %v574_v30 }
 0x1a8   : > { %v576_v32 = vmul.f32 0.5, %v575_v31 }
 0x1aa   : > { %v577_v33 = vsub.f32 1.5, %v576_v32 }
 0x1ac   : > { %v578_v34 = vmul.f32 %v1020_v29, %v577_v33 }
 0x1ae   : > { %v582_v36 = vsel %vm581_vm5, %v1020_v29, %v578_v34 }
 0x1af   : > { %v583_v38 = vmul.f32 %v582_v36, %v566_v21 }
 0x1b1   : > { %v587_v39 = vmul.f32 %v1011_v35, %v583_v38 }
 0x1b3   : > { %v591_v40 = vadd.f32 %v1012_v37, %v587_v39 }
 0x1b5   : > { %592 = vst.msk [vmem:[#allocation2] sm:$0xff] %vm554_vm1, %v591_v40  ;;  %v593_v41 = vpack.c.bf16 %v591_v40, %v591_v40 }
 0x1b7   : > { %595 = vst.msk [vmem:[#allocation3] sm:$0xf] %vm594_vm6, %v593_v41 }
 0x1bc   : > { %v706_v5 = vld [vmem:[#allocation2] sm:$0xff] }
 0x1be   : > { %v597_v42 = vld [vmem:[#allocation3] sm:$0xf] }
 0x1bf   : > { %921 = vmatmul.msk.bf16.vlgmr.msra.gmra.mxu1 %vm554_vm1, %v597_v42 }
 0x23c   : > { %v631_v49 = vpop.f32.mrf.mxu1 }
 0x23d   : > { %v632_v50 = vadd.f32 %v1013_v48, %v631_v49 }
 0x23f   : > { %v636_v51 = vmul.f32 %v632_v50, %v632_v50  ;;  %v635_v58 = vmul.f32 0.5, %v632_v50 }
 0x241   : > { %v637_v52 = vmul.f32 %v636_v51, %v632_v50 }
 0x243   : > { %v638_v53 = vmul.f32 0.044715, %v637_v52 }
 0x244   : > { %v633_v54 = vpop.f32.mrf.mxu1 }
 0x245   : > { %v639_v55 = vadd.f32 %v638_v53, %v632_v50 }
 0x247   : > { %v640_v56 = vmul.f32 0.7978846, %v639_v55 }
 0x249   : > { %1021 = vtanh.f32 %v640_v56 }
 0x24f   : > { %v1022_v57 = vpop.eup %1021 }
 0x250   : > { %v642_v59 = vadd.f32 1.0, %v1022_v57 }
 0x252   : > { %v643_v60 = vmul.f32 %v642_v59, %v635_v58 }
 0x254   : > { %v645_v61 = vpack.c.bf16 %v643_v60, %v643_v60 }
 0x256   : > { %938 = vmatmul.msk.bf16.vlgmr.msra.gmra.mxu2 %vm534_vm0, %v645_v61 }
 0x2d9   : > { %v691_v63 = vpop.f32.mrf.mxu2 }
 0x2da   : > { %v695_v0 = vadd.f32 %v691_v63, %v644_v62 }
 0x2dc   : > { %696 = vst.msk [vmem:[%s1286_s27] sm:$0xff] %vm554_vm1, %v695_v0 }
 0x2e1   : > { %v693_v2 = vpop.f32.mrf.mxu2 }
 0x2e3   : > { %v700_v3 = vld [vmem:[%s1286_s27] sm:$0xff] }
 0x2e4   : > { %v705_v4 = vadd.f32 %v1014_v1, %v700_v3 }
 0x2e6   : > { %v707_v6 = vadd.f32 %v706_v5, %v705_v4 }
 0x2e8   : > { %v710_v7 = vsel %vm554_vm1, %v707_v6, 0.0 }
 0x2e9   : > { %711 = vadd.xlane.f32.xlu1 %v710_v7 }
 0x35c   : > { %v712_v8 = vpop.xlane.xlu1 %711 }
 0x35d   : > { %v720_v9 = vmul.f32 %v712_v8, %v1252_v18 }
 0x35f   : > { %v721_v10 = vsub.f32 %v707_v6, %v720_v9 }
 0x361   : > { %v722_v11 = vmul.f32 %v721_v10, %v721_v10 }
 0x363   : > { %v723_v12 = vsel %vm554_vm1, %v722_v11, 0.0 }
 0x364   : > { %724 = vadd.xlane.f32.xlu1 %v723_v12 }
 0x3d7   : > { %v725_v13 = vpop.xlane.xlu1 %724 }
 0x3d8   : > { %v726_v14 = vmul.f32 %v725_v13, %v1252_v18 }
 0x3da   : > { %v727_v15 = vadd.f32 1e-05, %v726_v14 }
 0x3dc   : > { %1023 = vrsqrt.f32 %v727_v15  ;;  %vm734_vm8 = vweird.f32 %v727_v15 }
 0x3e2   : > { %v1024_v16 = vpop.eup %1023 }
 0x3e3   : > { %v729_v17 = vmul.f32 %v1024_v16, %v727_v15  ;;  %vm735_vm7 = vweird.f32 %v1024_v16 }
 0x3e4   : > { %vm736_vm9 = vmor %vm734_vm8, %vm735_vm7 }
 0x3e5   : > { %v730_v19 = vmul.f32 %v1024_v16, %v729_v17 }
 0x3e7   : > { %v731_v20 = vmul.f32 0.5, %v730_v19 }
 0x3e9   : > { %v732_v21 = vsub.f32 1.5, %v731_v20 }
 0x3eb   : > { %v733_v22 = vmul.f32 %v1024_v16, %v732_v21 }
 0x3ed   : > { %v737_v18 = vsel %vm736_vm9, %v1024_v16, %v733_v22 }
 0x3ee   : > { %v738_v25 = vmul.f32 %v737_v18, %v721_v10 }
 0x3f0   : > { %v742_v26 = vmul.f32 %v1015_v23, %v738_v25 }
 0x3f2   : > { %v746_v27 = vadd.f32 %v1016_v24, %v742_v26 }
 0x3f4   : > { %747 = vst.msk [vmem:[%s1286_s27] sm:$0xff] %vm554_vm1, %v746_v27 }
 0x3f5   : > { %1052 = shalt.err (!%p1049_p5)
}
 0x3f6   : > { %953 = dma.vmem_to_hbm [thread:$0]  (%p1212_p4), %s762_s24, 128, %s764_s17, %s749_s18  }
 0x3f7 PF: > { %p959_p6 = scmp.ge.s32.totalorder %s1103_s26, 2  ;;  %s775_s27 = sand.u32 1, %s1083_s21  }
 0x3f8   : > { %s776_s16 = scalar_lea.sflag [#allocation5], %s775_s27 }
 0x3f9   : > { %p956_p7 = pnand %p959_p6, %p1219_p8 }
 0x3fb   : > { %p957_p9 = pneg %p956_p7 }
 0x3fd   : > { %1078 = dma.done.wait (%p957_p9), %s776_s16, 128  }
 0x3fe   : > { %1080 = vsyncadd (%p957_p9), %s776_s16, 4294967168  ;;  %s25_s26 = sadd.s32 1, %s1103_s26   ;;  %s1377_s30 = sld [smem:[#allocation7_spill]] }
 0x3ff   : > { %p22_p10 = scmp.ge.s32.totalorder %s25_s26, 4   ;;  %s1378_s23 = sld [smem:[#allocation11_spill]] }
 0x400   : > { %s1379_s24 = sld [smem:[#allocation8_spill]]  ;;  %s1381_s21 = smov %s1087_s22 }
 0x401   : > { %s1380_s25 = sld [smem:[#allocation9_spill]]  ;;  %24 = sbr.rel (!%p22_p10) target bundleno = 4 (0x4), region = 123 }
 0x404   : > { %s1382_s22 = smov %s1377_s30 }
 0x406   :  { %782 = vsyncpa [#allocation5], 1 }
 0x407   :  { %784 = vsyncpa [#allocation5 + $0x1], 1 }

</bundles_post_ra>
